<compile_context>
chip_gen: v6e
topology: v6e:2x2x1
jax: 0.10.0
libtpu: 0.0.40
codegen_flags: <defaults>
</compile_context>

<pallas_src>
import functools

import jax
import jax.numpy as jnp
from jax import lax
from jax.experimental import pallas as pl
from jax.experimental.pallas import tpu as pltpu

# --- module hyperparameters (from the PyTorch source) ---
BLOCK_SIZE = 16                   # max sequence length (tril buffer size)
N_EMBD = 32                       # n_embd
NUM_HEADS = 4
HEAD_SIZE = N_EMBD // NUM_HEADS   # 8  (concat(heads) has n_embd channels)


def _mha_kernel(x_ref, wqkv_ref, wp_ref, bp_ref, o_ref, *, batch, seq):
    # x_ref    : (B*T, C)  all batch elements, rows flattened (sublane axis)
    # wqkv_ref : (C, 3C)   packed [Wq | Wk | Wv]; inside each, head h occupies
    #                      output cols [h*hs, (h+1)*hs)
    # wp_ref   : (C, C)    output projection weight (in, out layout)
    # bp_ref   : (1, C)    output projection bias
    # o_ref    : (B*T, C)
    R, C = x_ref.shape
    T = seq
    H, hs = NUM_HEADS, HEAD_SIZE
    scale = C ** (-0.5)            # PyTorch module scales by n_embd (C), not head_size

    xs = x_ref[...]

    # fused Q/K/V projection: one MXU weight-load/push instead of three
    qkv = jnp.dot(xs, wqkv_ref[...], preferred_element_type=jnp.float32)  # (R, 3C)

    # split once for the whole block (three 32-lane slices, amortized over
    # every (batch, head) iteration below; per-head slices are gone entirely)
    q = qkv[:, 0:C]
    k = qkv[:, C:2 * C]
    v = qkv[:, 2 * C:3 * C]

    # causal mask (col <= row).  Large finite negative instead of -inf so the
    # max-subtract stays NaN-safe even if padded / fully-masked rows appear.
    row = lax.broadcasted_iota(jnp.int32, (T, T), 0)
    col = lax.broadcasted_iota(jnp.int32, (T, T), 1)
    causal = row >= col
    neg_big = jnp.float32(-1e30)

    # per-head lane masks (hoisted out of the loops; VALU has huge slack here)
    lane = lax.broadcasted_iota(jnp.int32, (1, C), 1)
    head_masks = [((lane >= h * hs) & (lane < (h + 1) * hs)).astype(jnp.float32)
                  for h in range(H)]

    bias_rows = jnp.broadcast_to(bp_ref[...], (T, C)).astype(jnp.float32)

    ys = []
    for b in range(batch):                 # static unroll, batch is tiny
        r0 = b * T                         # aligned sublane slices (T = 16)
        qb = q[r0:r0 + T, :]
        kb = k[r0:r0 + T, :]
        vb = v[r0:r0 + T, :]

        y = bias_rows                      # accumulate projection + bias
        for h in range(H):                 # static unroll, H = 4
            m = head_masks[h]              # (1, C)

            # scores = q_h @ k_h^T without per-head slices or a materialized
            # transpose: contract over all C lanes; masked lanes contribute 0
            s = lax.dot_general(qb * m, kb, (((1,), (1,)), ((), ())),
                                preferred_element_type=jnp.float32) * scale
            s = jnp.where(causal, s, neg_big)

            # softmax along the last axis; reciprocal goes to the (otherwise
            # idle) EUP, one Newton step keeps ~1e-7 relative accuracy
            s = s - jnp.max(s, axis=-1, keepdims=True)
            p = jnp.exp(s)
            denom = jnp.sum(p, axis=-1, keepdims=True)
            r = pl.reciprocal(denom, approx=True)
            r = r * (2.0 - denom * r)
            p = p * r

            # t[:, head-h cols] == p @ v_h ; (t * m) @ Wp == o_h @ Wp[h rows]
            t = jnp.dot(p, vb, preferred_element_type=jnp.float32)      # (T, C)
            y = y + jnp.dot(t * m, wp_ref[...],
                            preferred_element_type=jnp.float32)
        ys.append(y)

    # single coalesced store of the whole output block
    o_ref[...] = jnp.concatenate(ys, axis=0).astype(o_ref.dtype)


def pack_qkv_weights(wq, wk, wv):
    """Pack per-head (H, C, hs) weights into a single (C, 3C) = [Wq | Wk | Wv].

    Inside each C-wide section, head h occupies output columns
    [h*hs, (h+1)*hs).  Call ONCE at init (hoisted out of the forward path)."""
    def pack(w):
        return jnp.transpose(w, (1, 0, 2)).reshape(N_EMBD, NUM_HEADS * HEAD_SIZE)
    return jnp.concatenate([pack(wq), pack(wk), pack(wv)], axis=1)


def multi_head_attention(x, wqkv, w_proj, b_proj):
    """x: (B, T, C); wqkv: (C, 3C) packed; w_proj: (C, C); b_proj: (1, C)."""
    B, T, C = x.shape
    xs = x.reshape(B * T, C)   # metadata-only reshape on the XLA side

    out = pl.pallas_call(
        functools.partial(_mha_kernel, batch=B, seq=T),
        out_shape=jax.ShapeDtypeStruct((B * T, C), jnp.float32),
        # Single grid step: everything is VMEM-resident and per-step pipeline
        # overhead would dominate the sub-microsecond useful compute.
        grid=(1,),
        in_specs=[
            pl.BlockSpec((B * T, C), lambda i: (0, 0)),    # x (flattened rows)
            pl.BlockSpec((C, 3 * C), lambda i: (0, 0)),    # packed Wqkv
            pl.BlockSpec((C, C), lambda i: (0, 0)),        # Wproj
            pl.BlockSpec((1, C), lambda i: (0, 0)),        # bproj
        ],
        out_specs=pl.BlockSpec((B * T, C), lambda i: (0, 0)),
        compiler_params=pltpu.CompilerParams(
            dimension_semantics=("arbitrary",)),
    )(xs, wqkv, w_proj, b_proj)
    return out.reshape(B, T, C)


def _reference(x, wq, wk, wv, w_proj, b_proj):
    """Pure-JAX reference mirroring the PyTorch forward (eval mode)."""
    B, T, C = x.shape
    tril = jnp.tril(jnp.ones((T, T)))
    outs = []
    for h in range(NUM_HEADS):
        q = x @ wq[h]
        k = x @ wk[h]
        v = x @ wv[h]
        wei = (q @ jnp.swapaxes(k, -2, -1)) * C ** (-0.5)
        wei = jnp.where(tril == 0, -jnp.inf, wei)
        wei = jax.nn.softmax(wei, axis=-1)
        outs.append(wei @ v)
    cat = jnp.concatenate(outs, axis=-1)
    return cat @ w_proj + b_proj[0]


if __name__ == "__main__":
    key = jax.random.PRNGKey(0)
    k_x, k_q, k_k, k_v, k_p, k_b = jax.random.split(key, 6)

    B, T, C = 2, BLOCK_SIZE, N_EMBD
    x = jax.random.normal(k_x, (B, T, C), dtype=jnp.float32)

    # deterministic parameter init (roughly Linear's U(-1/sqrt(fan_in), ...))
    s = 1.0 / jnp.sqrt(jnp.float32(C))
    wq = jax.random.uniform(k_q, (NUM_HEADS, C, HEAD_SIZE), jnp.float32, -s, s)
    wk = jax.random.uniform(k_k, (NUM_HEADS, C, HEAD_SIZE), jnp.float32, -s, s)
    wv = jax.random.uniform(k_v, (NUM_HEADS, C, HEAD_SIZE), jnp.float32, -s, s)
    w_proj = jax.random.uniform(k_p, (C, C), jnp.float32, -s, s)
    b_proj = jax.random.uniform(k_b, (1, C), jnp.float32, -s, s)

    # pack Q/K/V weights ONCE at init, not per forward call (perf review)
    wqkv = jax.block_until_ready(pack_qkv_weights(wq, wk, wv))

    out = multi_head_attention(x, wqkv, w_proj, b_proj)
    out = jax.block_until_ready(out)

    ref = _reference(x, wq, wk, wv, w_proj, b_proj)
    assert out.shape == (B, T, C)
    # tolerance slightly relaxed from 1e-5 because the softmax denominator now
    # uses the EUP approximate reciprocal (+1 Newton step) instead of an exact
    # divide; everything else is bit-compatible with the previous version.
    assert jnp.allclose(out, ref, atol=2e-5, rtol=2e-5), "mismatch vs reference"

    print("KERNEL_OK")
</pallas_src>

<mosaic_0001>
module attributes {stable_mosaic.version = 11 : i64} {
  func.func @_mha_kernel(%arg0: i32, %arg1: memref<32x32xf32, #tpu.memory_space<vmem>>, %arg2: memref<32x96xf32, #tpu.memory_space<vmem>>, %arg3: memref<32x32xf32, #tpu.memory_space<vmem>>, %arg4: memref<1x32xf32, #tpu.memory_space<vmem>>, %arg5: memref<32x32xf32, #tpu.memory_space<vmem>>) attributes {dimension_semantics = [#tpu.dimension_semantics<arbitrary>], iteration_bounds = array<i64: 1>, scalar_prefetch = 0 : i64, scratch_operands = 0 : i64, tpu.core_type = #tpu.core_type<tc>, window_params = [{pipeline_mode = #tpu.pipeline_mode<synchronous>, transform_indices = @transform_0, window_bounds = array<i64: 32, 32>}, {pipeline_mode = #tpu.pipeline_mode<synchronous>, transform_indices = @transform_1, window_bounds = array<i64: 32, 96>}, {pipeline_mode = #tpu.pipeline_mode<synchronous>, transform_indices = @transform_2, window_bounds = array<i64: 32, 32>}, {pipeline_mode = #tpu.pipeline_mode<synchronous>, transform_indices = @transform_3, window_bounds = array<i64: 1, 32>}, {pipeline_mode = #tpu.pipeline_mode<synchronous>, transform_indices = @transform_4, window_bounds = array<i64: 32, 32>}]} {
    %c0 = arith.constant 0 : index
    %c0_0 = arith.constant 0 : index
    %0 = vector.load %arg1[%c0, %c0_0] : memref<32x32xf32, #tpu.memory_space<vmem>>, vector<32x32xf32>
    %c0_1 = arith.constant 0 : index
    %c0_2 = arith.constant 0 : index
    %1 = vector.load %arg2[%c0_1, %c0_2] : memref<32x96xf32, #tpu.memory_space<vmem>>, vector<32x96xf32>
    %cst = arith.constant dense<0.000000e+00> : vector<32x96xf32>
    %2 = tpu.matmul %0, %1, %cst {dimension_numbers = #tpu.dot_dimension_numbers<[1], [0], [0], [1], [0, 0, 1, 1], [], []>} : vector<32x32xf32>, vector<32x96xf32>, vector<32x96xf32> -> vector<32x96xf32>
    %3 = vector.extract_strided_slice %2 {offsets = [0, 0], sizes = [32, 32], strides = [1, 1]} : vector<32x96xf32> to vector<32x32xf32>
    %4 = vector.extract_strided_slice %2 {offsets = [0, 32], sizes = [32, 32], strides = [1, 1]} : vector<32x96xf32> to vector<32x32xf32>
    %5 = vector.extract_strided_slice %2 {offsets = [0, 64], sizes = [32, 32], strides = [1, 1]} : vector<32x96xf32> to vector<32x32xf32>
    %6 = tpu.iota {dimensions = array<i32: 0>} : vector<16x16xi32>
    %7 = tpu.iota {dimensions = array<i32: 1>} : vector<16x16xi32>
    %8 = arith.cmpi sge, %6, %7 : vector<16x16xi32>
    %9 = tpu.iota {dimensions = array<i32: 1>} : vector<1x32xi32>
    %c0_i32 = arith.constant 0 : i32
    %10 = vector.broadcast %c0_i32 : i32 to vector<1x32xi32>
    %11 = arith.cmpi sge, %9, %10 : vector<1x32xi32>
    %c8_i32 = arith.constant 8 : i32
    %12 = vector.broadcast %c8_i32 : i32 to vector<1x32xi32>
    %13 = arith.cmpi slt, %9, %12 : vector<1x32xi32>
    %14 = arith.andi %11, %13 : vector<1x32xi1>
    %15 = arith.extui %14 : vector<1x32xi1> to vector<1x32xi32>
    %16 = arith.sitofp %15 : vector<1x32xi32> to vector<1x32xf32>
    %c8_i32_3 = arith.constant 8 : i32
    %17 = vector.broadcast %c8_i32_3 : i32 to vector<1x32xi32>
    %18 = arith.cmpi sge, %9, %17 : vector<1x32xi32>
    %c16_i32 = arith.constant 16 : i32
    %19 = vector.broadcast %c16_i32 : i32 to vector<1x32xi32>
    %20 = arith.cmpi slt, %9, %19 : vector<1x32xi32>
    %21 = arith.andi %18, %20 : vector<1x32xi1>
    %22 = arith.extui %21 : vector<1x32xi1> to vector<1x32xi32>
    %23 = arith.sitofp %22 : vector<1x32xi32> to vector<1x32xf32>
    %c16_i32_4 = arith.constant 16 : i32
    %24 = vector.broadcast %c16_i32_4 : i32 to vector<1x32xi32>
    %25 = arith.cmpi sge, %9, %24 : vector<1x32xi32>
    %c24_i32 = arith.constant 24 : i32
    %26 = vector.broadcast %c24_i32 : i32 to vector<1x32xi32>
    %27 = arith.cmpi slt, %9, %26 : vector<1x32xi32>
    %28 = arith.andi %25, %27 : vector<1x32xi1>
    %29 = arith.extui %28 : vector<1x32xi1> to vector<1x32xi32>
    %30 = arith.sitofp %29 : vector<1x32xi32> to vector<1x32xf32>
    %c24_i32_5 = arith.constant 24 : i32
    %31 = vector.broadcast %c24_i32_5 : i32 to vector<1x32xi32>
    %32 = arith.cmpi sge, %9, %31 : vector<1x32xi32>
    %c32_i32 = arith.constant 32 : i32
    %33 = vector.broadcast %c32_i32 : i32 to vector<1x32xi32>
    %34 = arith.cmpi slt, %9, %33 : vector<1x32xi32>
    %35 = arith.andi %32, %34 : vector<1x32xi1>
    %36 = arith.extui %35 : vector<1x32xi1> to vector<1x32xi32>
    %37 = arith.sitofp %36 : vector<1x32xi32> to vector<1x32xf32>
    %c0_6 = arith.constant 0 : index
    %c0_7 = arith.constant 0 : index
    %38 = vector.load %arg4[%c0_6, %c0_7] : memref<1x32xf32, #tpu.memory_space<vmem>>, vector<1x32xf32>
    %39 = vector.shape_cast %38 : vector<1x32xf32> to vector<1x32xf32>
    %40 = vector.broadcast %39 : vector<1x32xf32> to vector<16x32xf32>
    %41 = vector.extract_strided_slice %3 {offsets = [0, 0], sizes = [16, 32], strides = [1, 1]} : vector<32x32xf32> to vector<16x32xf32>
    %42 = vector.extract_strided_slice %4 {offsets = [0, 0], sizes = [16, 32], strides = [1, 1]} : vector<32x32xf32> to vector<16x32xf32>
    %43 = vector.extract_strided_slice %5 {offsets = [0, 0], sizes = [16, 32], strides = [1, 1]} : vector<32x32xf32> to vector<16x32xf32>
    %44 = vector.broadcast %16 : vector<1x32xf32> to vector<16x32xf32>
    %45 = arith.mulf %41, %44 : vector<16x32xf32>
    %cst_8 = arith.constant dense<0.000000e+00> : vector<16x16xf32>
    %46 = tpu.matmul %45, %42, %cst_8 {dimension_numbers = #tpu.dot_dimension_numbers<[1], [1], [0], [0], [0, 0, 1, 0], [], []>} : vector<16x32xf32>, vector<16x32xf32>, vector<16x16xf32> -> vector<16x16xf32>
    %cst_9 = arith.constant 0.176776692 : f32
    %47 = vector.broadcast %cst_9 : f32 to vector<16x16xf32>
    %48 = arith.mulf %46, %47 : vector<16x16xf32>
    %cst_10 = arith.constant -1.000000e+30 : f32
    %49 = vector.broadcast %cst_10 : f32 to vector<16x16xf32>
    %50 = arith.select %8, %48, %49 : vector<16x16xi1>, vector<16x16xf32>
    %cst_11 = arith.constant dense<0xFF800000> : vector<16xf32>
    %51 = vector.multi_reduction <maximumf>, %50, %cst_11 [1] : vector<16x16xf32> to vector<16xf32>
    %52 = vector.shape_cast %51 : vector<16xf32> to vector<16x1xf32>
    %53 = vector.broadcast %52 : vector<16x1xf32> to vector<16x16xf32>
    %54 = arith.subf %50, %53 : vector<16x16xf32>
    %55 = math.exp %54 : vector<16x16xf32>
    %cst_12 = arith.constant dense<0.000000e+00> : vector<16xf32>
    %56 = vector.multi_reduction <add>, %55, %cst_12 [1] : vector<16x16xf32> to vector<16xf32>
    %57 = vector.shape_cast %56 : vector<16xf32> to vector<16x1xf32>
    %58 = tpu.reciprocal %57 {approx = true} : vector<16x1xf32> -> vector<16x1xf32>
    %59 = arith.mulf %57, %58 : vector<16x1xf32>
    %cst_13 = arith.constant 2.000000e+00 : f32
    %60 = vector.broadcast %cst_13 : f32 to vector<16x1xf32>
    %61 = arith.subf %60, %59 : vector<16x1xf32>
    %62 = arith.mulf %58, %61 : vector<16x1xf32>
    %63 = vector.broadcast %62 : vector<16x1xf32> to vector<16x16xf32>
    %64 = arith.mulf %55, %63 : vector<16x16xf32>
    %cst_14 = arith.constant dense<0.000000e+00> : vector<16x32xf32>
    %65 = tpu.matmul %64, %43, %cst_14 {dimension_numbers = #tpu.dot_dimension_numbers<[1], [0], [0], [1], [0, 0, 1, 1], [], []>} : vector<16x16xf32>, vector<16x32xf32>, vector<16x32xf32> -> vector<16x32xf32>
    %66 = vector.broadcast %16 : vector<1x32xf32> to vector<16x32xf32>
    %67 = arith.mulf %65, %66 : vector<16x32xf32>
    %c0_15 = arith.constant 0 : index
    %c0_16 = arith.constant 0 : index
    %68 = vector.load %arg3[%c0_15, %c0_16] : memref<32x32xf32, #tpu.memory_space<vmem>>, vector<32x32xf32>
    %cst_17 = arith.constant dense<0.000000e+00> : vector<16x32xf32>
    %69 = tpu.matmul %67, %68, %cst_17 {dimension_numbers = #tpu.dot_dimension_numbers<[1], [0], [0], [1], [0, 0, 1, 1], [], []>} : vector<16x32xf32>, vector<32x32xf32>, vector<16x32xf32> -> vector<16x32xf32>
    %70 = arith.addf %40, %69 : vector<16x32xf32>
    %71 = vector.broadcast %23 : vector<1x32xf32> to vector<16x32xf32>
    %72 = arith.mulf %41, %71 : vector<16x32xf32>
    %cst_18 = arith.constant dense<0.000000e+00> : vector<16x16xf32>
    %73 = tpu.matmul %72, %42, %cst_18 {dimension_numbers = #tpu.dot_dimension_numbers<[1], [1], [0], [0], [0, 0, 1, 0], [], []>} : vector<16x32xf32>, vector<16x32xf32>, vector<16x16xf32> -> vector<16x16xf32>
    %cst_19 = arith.constant 0.176776692 : f32
    %74 = vector.broadcast %cst_19 : f32 to vector<16x16xf32>
    %75 = arith.mulf %73, %74 : vector<16x16xf32>
    %cst_20 = arith.constant -1.000000e+30 : f32
    %76 = vector.broadcast %cst_20 : f32 to vector<16x16xf32>
    %77 = arith.select %8, %75, %76 : vector<16x16xi1>, vector<16x16xf32>
    %cst_21 = arith.constant dense<0xFF800000> : vector<16xf32>
    %78 = vector.multi_reduction <maximumf>, %77, %cst_21 [1] : vector<16x16xf32> to vector<16xf32>
    %79 = vector.shape_cast %78 : vector<16xf32> to vector<16x1xf32>
    %80 = vector.broadcast %79 : vector<16x1xf32> to vector<16x16xf32>
    %81 = arith.subf %77, %80 : vector<16x16xf32>
    %82 = math.exp %81 : vector<16x16xf32>
    %cst_22 = arith.constant dense<0.000000e+00> : vector<16xf32>
    %83 = vector.multi_reduction <add>, %82, %cst_22 [1] : vector<16x16xf32> to vector<16xf32>
    %84 = vector.shape_cast %83 : vector<16xf32> to vector<16x1xf32>
    %85 = tpu.reciprocal %84 {approx = true} : vector<16x1xf32> -> vector<16x1xf32>
    %86 = arith.mulf %84, %85 : vector<16x1xf32>
    %cst_23 = arith.constant 2.000000e+00 : f32
    %87 = vector.broadcast %cst_23 : f32 to vector<16x1xf32>
    %88 = arith.subf %87, %86 : vector<16x1xf32>
    %89 = arith.mulf %85, %88 : vector<16x1xf32>
    %90 = vector.broadcast %89 : vector<16x1xf32> to vector<16x16xf32>
    %91 = arith.mulf %82, %90 : vector<16x16xf32>
    %cst_24 = arith.constant dense<0.000000e+00> : vector<16x32xf32>
    %92 = tpu.matmul %91, %43, %cst_24 {dimension_numbers = #tpu.dot_dimension_numbers<[1], [0], [0], [1], [0, 0, 1, 1], [], []>} : vector<16x16xf32>, vector<16x32xf32>, vector<16x32xf32> -> vector<16x32xf32>
    %93 = vector.broadcast %23 : vector<1x32xf32> to vector<16x32xf32>
    %94 = arith.mulf %92, %93 : vector<16x32xf32>
    %c0_25 = arith.constant 0 : index
    %c0_26 = arith.constant 0 : index
    %95 = vector.load %arg3[%c0_25, %c0_26] : memref<32x32xf32, #tpu.memory_space<vmem>>, vector<32x32xf32>
    %cst_27 = arith.constant dense<0.000000e+00> : vector<16x32xf32>
    %96 = tpu.matmul %94, %95, %cst_27 {dimension_numbers = #tpu.dot_dimension_numbers<[1], [0], [0], [1], [0, 0, 1, 1], [], []>} : vector<16x32xf32>, vector<32x32xf32>, vector<16x32xf32> -> vector<16x32xf32>
    %97 = arith.addf %70, %96 : vector<16x32xf32>
    %98 = vector.broadcast %30 : vector<1x32xf32> to vector<16x32xf32>
    %99 = arith.mulf %41, %98 : vector<16x32xf32>
    %cst_28 = arith.constant dense<0.000000e+00> : vector<16x16xf32>
    %100 = tpu.matmul %99, %42, %cst_28 {dimension_numbers = #tpu.dot_dimension_numbers<[1], [1], [0], [0], [0, 0, 1, 0], [], []>} : vector<16x32xf32>, vector<16x32xf32>, vector<16x16xf32> -> vector<16x16xf32>
    %cst_29 = arith.constant 0.176776692 : f32
    %101 = vector.broadcast %cst_29 : f32 to vector<16x16xf32>
    %102 = arith.mulf %100, %101 : vector<16x16xf32>
    %cst_30 = arith.constant -1.000000e+30 : f32
    %103 = vector.broadcast %cst_30 : f32 to vector<16x16xf32>
    %104 = arith.select %8, %102, %103 : vector<16x16xi1>, vector<16x16xf32>
    %cst_31 = arith.constant dense<0xFF800000> : vector<16xf32>
    %105 = vector.multi_reduction <maximumf>, %104, %cst_31 [1] : vector<16x16xf32> to vector<16xf32>
    %106 = vector.shape_cast %105 : vector<16xf32> to vector<16x1xf32>
    %107 = vector.broadcast %106 : vector<16x1xf32> to vector<16x16xf32>
    %108 = arith.subf %104, %107 : vector<16x16xf32>
    %109 = math.exp %108 : vector<16x16xf32>
    %cst_32 = arith.constant dense<0.000000e+00> : vector<16xf32>
    %110 = vector.multi_reduction <add>, %109, %cst_32 [1] : vector<16x16xf32> to vector<16xf32>
    %111 = vector.shape_cast %110 : vector<16xf32> to vector<16x1xf32>
    %112 = tpu.reciprocal %111 {approx = true} : vector<16x1xf32> -> vector<16x1xf32>
    %113 = arith.mulf %111, %112 : vector<16x1xf32>
    %cst_33 = arith.constant 2.000000e+00 : f32
    %114 = vector.broadcast %cst_33 : f32 to vector<16x1xf32>
    %115 = arith.subf %114, %113 : vector<16x1xf32>
    %116 = arith.mulf %112, %115 : vector<16x1xf32>
    %117 = vector.broadcast %116 : vector<16x1xf32> to vector<16x16xf32>
    %118 = arith.mulf %109, %117 : vector<16x16xf32>
    %cst_34 = arith.constant dense<0.000000e+00> : vector<16x32xf32>
    %119 = tpu.matmul %118, %43, %cst_34 {dimension_numbers = #tpu.dot_dimension_numbers<[1], [0], [0], [1], [0, 0, 1, 1], [], []>} : vector<16x16xf32>, vector<16x32xf32>, vector<16x32xf32> -> vector<16x32xf32>
    %120 = vector.broadcast %30 : vector<1x32xf32> to vector<16x32xf32>
    %121 = arith.mulf %119, %120 : vector<16x32xf32>
    %c0_35 = arith.constant 0 : index
    %c0_36 = arith.constant 0 : index
    %122 = vector.load %arg3[%c0_35, %c0_36] : memref<32x32xf32, #tpu.memory_space<vmem>>, vector<32x32xf32>
    %cst_37 = arith.constant dense<0.000000e+00> : vector<16x32xf32>
    %123 = tpu.matmul %121, %122, %cst_37 {dimension_numbers = #tpu.dot_dimension_numbers<[1], [0], [0], [1], [0, 0, 1, 1], [], []>} : vector<16x32xf32>, vector<32x32xf32>, vector<16x32xf32> -> vector<16x32xf32>
    %124 = arith.addf %97, %123 : vector<16x32xf32>
    %125 = vector.broadcast %37 : vector<1x32xf32> to vector<16x32xf32>
    %126 = arith.mulf %41, %125 : vector<16x32xf32>
    %cst_38 = arith.constant dense<0.000000e+00> : vector<16x16xf32>
    %127 = tpu.matmul %126, %42, %cst_38 {dimension_numbers = #tpu.dot_dimension_numbers<[1], [1], [0], [0], [0, 0, 1, 0], [], []>} : vector<16x32xf32>, vector<16x32xf32>, vector<16x16xf32> -> vector<16x16xf32>
    %cst_39 = arith.constant 0.176776692 : f32
    %128 = vector.broadcast %cst_39 : f32 to vector<16x16xf32>
    %129 = arith.mulf %127, %128 : vector<16x16xf32>
    %cst_40 = arith.constant -1.000000e+30 : f32
    %130 = vector.broadcast %cst_40 : f32 to vector<16x16xf32>
    %131 = arith.select %8, %129, %130 : vector<16x16xi1>, vector<16x16xf32>
    %cst_41 = arith.constant dense<0xFF800000> : vector<16xf32>
    %132 = vector.multi_reduction <maximumf>, %131, %cst_41 [1] : vector<16x16xf32> to vector<16xf32>
    %133 = vector.shape_cast %132 : vector<16xf32> to vector<16x1xf32>
    %134 = vector.broadcast %133 : vector<16x1xf32> to vector<16x16xf32>
    %135 = arith.subf %131, %134 : vector<16x16xf32>
    %136 = math.exp %135 : vector<16x16xf32>
    %cst_42 = arith.constant dense<0.000000e+00> : vector<16xf32>
    %137 = vector.multi_reduction <add>, %136, %cst_42 [1] : vector<16x16xf32> to vector<16xf32>
    %138 = vector.shape_cast %137 : vector<16xf32> to vector<16x1xf32>
    %139 = tpu.reciprocal %138 {approx = true} : vector<16x1xf32> -> vector<16x1xf32>
    %140 = arith.mulf %138, %139 : vector<16x1xf32>
    %cst_43 = arith.constant 2.000000e+00 : f32
    %141 = vector.broadcast %cst_43 : f32 to vector<16x1xf32>
    %142 = arith.subf %141, %140 : vector<16x1xf32>
    %143 = arith.mulf %139, %142 : vector<16x1xf32>
    %144 = vector.broadcast %143 : vector<16x1xf32> to vector<16x16xf32>
    %145 = arith.mulf %136, %144 : vector<16x16xf32>
    %cst_44 = arith.constant dense<0.000000e+00> : vector<16x32xf32>
    %146 = tpu.matmul %145, %43, %cst_44 {dimension_numbers = #tpu.dot_dimension_numbers<[1], [0], [0], [1], [0, 0, 1, 1], [], []>} : vector<16x16xf32>, vector<16x32xf32>, vector<16x32xf32> -> vector<16x32xf32>
    %147 = vector.broadcast %37 : vector<1x32xf32> to vector<16x32xf32>
    %148 = arith.mulf %146, %147 : vector<16x32xf32>
    %c0_45 = arith.constant 0 : index
    %c0_46 = arith.constant 0 : index
    %149 = vector.load %arg3[%c0_45, %c0_46] : memref<32x32xf32, #tpu.memory_space<vmem>>, vector<32x32xf32>
    %cst_47 = arith.constant dense<0.000000e+00> : vector<16x32xf32>
    %150 = tpu.matmul %148, %149, %cst_47 {dimension_numbers = #tpu.dot_dimension_numbers<[1], [0], [0], [1], [0, 0, 1, 1], [], []>} : vector<16x32xf32>, vector<32x32xf32>, vector<16x32xf32> -> vector<16x32xf32>
    %151 = arith.addf %124, %150 : vector<16x32xf32>
    %152 = vector.extract_strided_slice %3 {offsets = [16, 0], sizes = [16, 32], strides = [1, 1]} : vector<32x32xf32> to vector<16x32xf32>
    %153 = vector.extract_strided_slice %4 {offsets = [16, 0], sizes = [16, 32], strides = [1, 1]} : vector<32x32xf32> to vector<16x32xf32>
    %154 = vector.extract_strided_slice %5 {offsets = [16, 0], sizes = [16, 32], strides = [1, 1]} : vector<32x32xf32> to vector<16x32xf32>
    %155 = vector.broadcast %16 : vector<1x32xf32> to vector<16x32xf32>
    %156 = arith.mulf %152, %155 : vector<16x32xf32>
    %cst_48 = arith.constant dense<0.000000e+00> : vector<16x16xf32>
    %157 = tpu.matmul %156, %153, %cst_48 {dimension_numbers = #tpu.dot_dimension_numbers<[1], [1], [0], [0], [0, 0, 1, 0], [], []>} : vector<16x32xf32>, vector<16x32xf32>, vector<16x16xf32> -> vector<16x16xf32>
    %cst_49 = arith.constant 0.176776692 : f32
    %158 = vector.broadcast %cst_49 : f32 to vector<16x16xf32>
    %159 = arith.mulf %157, %158 : vector<16x16xf32>
    %cst_50 = arith.constant -1.000000e+30 : f32
    %160 = vector.broadcast %cst_50 : f32 to vector<16x16xf32>
    %161 = arith.select %8, %159, %160 : vector<16x16xi1>, vector<16x16xf32>
    %cst_51 = arith.constant dense<0xFF800000> : vector<16xf32>
    %162 = vector.multi_reduction <maximumf>, %161, %cst_51 [1] : vector<16x16xf32> to vector<16xf32>
    %163 = vector.shape_cast %162 : vector<16xf32> to vector<16x1xf32>
    %164 = vector.broadcast %163 : vector<16x1xf32> to vector<16x16xf32>
    %165 = arith.subf %161, %164 : vector<16x16xf32>
    %166 = math.exp %165 : vector<16x16xf32>
    %cst_52 = arith.constant dense<0.000000e+00> : vector<16xf32>
    %167 = vector.multi_reduction <add>, %166, %cst_52 [1] : vector<16x16xf32> to vector<16xf32>
    %168 = vector.shape_cast %167 : vector<16xf32> to vector<16x1xf32>
    %169 = tpu.reciprocal %168 {approx = true} : vector<16x1xf32> -> vector<16x1xf32>
    %170 = arith.mulf %168, %169 : vector<16x1xf32>
    %cst_53 = arith.constant 2.000000e+00 : f32
    %171 = vector.broadcast %cst_53 : f32 to vector<16x1xf32>
    %172 = arith.subf %171, %170 : vector<16x1xf32>
    %173 = arith.mulf %169, %172 : vector<16x1xf32>
    %174 = vector.broadcast %173 : vector<16x1xf32> to vector<16x16xf32>
    %175 = arith.mulf %166, %174 : vector<16x16xf32>
    %cst_54 = arith.constant dense<0.000000e+00> : vector<16x32xf32>
    %176 = tpu.matmul %175, %154, %cst_54 {dimension_numbers = #tpu.dot_dimension_numbers<[1], [0], [0], [1], [0, 0, 1, 1], [], []>} : vector<16x16xf32>, vector<16x32xf32>, vector<16x32xf32> -> vector<16x32xf32>
    %177 = vector.broadcast %16 : vector<1x32xf32> to vector<16x32xf32>
    %178 = arith.mulf %176, %177 : vector<16x32xf32>
    %c0_55 = arith.constant 0 : index
    %c0_56 = arith.constant 0 : index
    %179 = vector.load %arg3[%c0_55, %c0_56] : memref<32x32xf32, #tpu.memory_space<vmem>>, vector<32x32xf32>
    %cst_57 = arith.constant dense<0.000000e+00> : vector<16x32xf32>
    %180 = tpu.matmul %178, %179, %cst_57 {dimension_numbers = #tpu.dot_dimension_numbers<[1], [0], [0], [1], [0, 0, 1, 1], [], []>} : vector<16x32xf32>, vector<32x32xf32>, vector<16x32xf32> -> vector<16x32xf32>
    %181 = arith.addf %40, %180 : vector<16x32xf32>
    %182 = vector.broadcast %23 : vector<1x32xf32> to vector<16x32xf32>
    %183 = arith.mulf %152, %182 : vector<16x32xf32>
    %cst_58 = arith.constant dense<0.000000e+00> : vector<16x16xf32>
    %184 = tpu.matmul %183, %153, %cst_58 {dimension_numbers = #tpu.dot_dimension_numbers<[1], [1], [0], [0], [0, 0, 1, 0], [], []>} : vector<16x32xf32>, vector<16x32xf32>, vector<16x16xf32> -> vector<16x16xf32>
    %cst_59 = arith.constant 0.176776692 : f32
    %185 = vector.broadcast %cst_59 : f32 to vector<16x16xf32>
    %186 = arith.mulf %184, %185 : vector<16x16xf32>
    %cst_60 = arith.constant -1.000000e+30 : f32
    %187 = vector.broadcast %cst_60 : f32 to vector<16x16xf32>
    %188 = arith.select %8, %186, %187 : vector<16x16xi1>, vector<16x16xf32>
    %cst_61 = arith.constant dense<0xFF800000> : vector<16xf32>
    %189 = vector.multi_reduction <maximumf>, %188, %cst_61 [1] : vector<16x16xf32> to vector<16xf32>
    %190 = vector.shape_cast %189 : vector<16xf32> to vector<16x1xf32>
    %191 = vector.broadcast %190 : vector<16x1xf32> to vector<16x16xf32>
    %192 = arith.subf %188, %191 : vector<16x16xf32>
    %193 = math.exp %192 : vector<16x16xf32>
    %cst_62 = arith.constant dense<0.000000e+00> : vector<16xf32>
    %194 = vector.multi_reduction <add>, %193, %cst_62 [1] : vector<16x16xf32> to vector<16xf32>
    %195 = vector.shape_cast %194 : vector<16xf32> to vector<16x1xf32>
    %196 = tpu.reciprocal %195 {approx = true} : vector<16x1xf32> -> vector<16x1xf32>
    %197 = arith.mulf %195, %196 : vector<16x1xf32>
    %cst_63 = arith.constant 2.000000e+00 : f32
    %198 = vector.broadcast %cst_63 : f32 to vector<16x1xf32>
    %199 = arith.subf %198, %197 : vector<16x1xf32>
    %200 = arith.mulf %196, %199 : vector<16x1xf32>
    %201 = vector.broadcast %200 : vector<16x1xf32> to vector<16x16xf32>
    %202 = arith.mulf %193, %201 : vector<16x16xf32>
    %cst_64 = arith.constant dense<0.000000e+00> : vector<16x32xf32>
    %203 = tpu.matmul %202, %154, %cst_64 {dimension_numbers = #tpu.dot_dimension_numbers<[1], [0], [0], [1], [0, 0, 1, 1], [], []>} : vector<16x16xf32>, vector<16x32xf32>, vector<16x32xf32> -> vector<16x32xf32>
    %204 = vector.broadcast %23 : vector<1x32xf32> to vector<16x32xf32>
    %205 = arith.mulf %203, %204 : vector<16x32xf32>
    %c0_65 = arith.constant 0 : index
    %c0_66 = arith.constant 0 : index
    %206 = vector.load %arg3[%c0_65, %c0_66] : memref<32x32xf32, #tpu.memory_space<vmem>>, vector<32x32xf32>
    %cst_67 = arith.constant dense<0.000000e+00> : vector<16x32xf32>
    %207 = tpu.matmul %205, %206, %cst_67 {dimension_numbers = #tpu.dot_dimension_numbers<[1], [0], [0], [1], [0, 0, 1, 1], [], []>} : vector<16x32xf32>, vector<32x32xf32>, vector<16x32xf32> -> vector<16x32xf32>
    %208 = arith.addf %181, %207 : vector<16x32xf32>
    %209 = vector.broadcast %30 : vector<1x32xf32> to vector<16x32xf32>
    %210 = arith.mulf %152, %209 : vector<16x32xf32>
    %cst_68 = arith.constant dense<0.000000e+00> : vector<16x16xf32>
    %211 = tpu.matmul %210, %153, %cst_68 {dimension_numbers = #tpu.dot_dimension_numbers<[1], [1], [0], [0], [0, 0, 1, 0], [], []>} : vector<16x32xf32>, vector<16x32xf32>, vector<16x16xf32> -> vector<16x16xf32>
    %cst_69 = arith.constant 0.176776692 : f32
    %212 = vector.broadcast %cst_69 : f32 to vector<16x16xf32>
    %213 = arith.mulf %211, %212 : vector<16x16xf32>
    %cst_70 = arith.constant -1.000000e+30 : f32
    %214 = vector.broadcast %cst_70 : f32 to vector<16x16xf32>
    %215 = arith.select %8, %213, %214 : vector<16x16xi1>, vector<16x16xf32>
    %cst_71 = arith.constant dense<0xFF800000> : vector<16xf32>
    %216 = vector.multi_reduction <maximumf>, %215, %cst_71 [1] : vector<16x16xf32> to vector<16xf32>
    %217 = vector.shape_cast %216 : vector<16xf32> to vector<16x1xf32>
    %218 = vector.broadcast %217 : vector<16x1xf32> to vector<16x16xf32>
    %219 = arith.subf %215, %218 : vector<16x16xf32>
    %220 = math.exp %219 : vector<16x16xf32>
    %cst_72 = arith.constant dense<0.000000e+00> : vector<16xf32>
    %221 = vector.multi_reduction <add>, %220, %cst_72 [1] : vector<16x16xf32> to vector<16xf32>
    %222 = vector.shape_cast %221 : vector<16xf32> to vector<16x1xf32>
    %223 = tpu.reciprocal %222 {approx = true} : vector<16x1xf32> -> vector<16x1xf32>
    %224 = arith.mulf %222, %223 : vector<16x1xf32>
    %cst_73 = arith.constant 2.000000e+00 : f32
    %225 = vector.broadcast %cst_73 : f32 to vector<16x1xf32>
    %226 = arith.subf %225, %224 : vector<16x1xf32>
    %227 = arith.mulf %223, %226 : vector<16x1xf32>
    %228 = vector.broadcast %227 : vector<16x1xf32> to vector<16x16xf32>
    %229 = arith.mulf %220, %228 : vector<16x16xf32>
    %cst_74 = arith.constant dense<0.000000e+00> : vector<16x32xf32>
    %230 = tpu.matmul %229, %154, %cst_74 {dimension_numbers = #tpu.dot_dimension_numbers<[1], [0], [0], [1], [0, 0, 1, 1], [], []>} : vector<16x16xf32>, vector<16x32xf32>, vector<16x32xf32> -> vector<16x32xf32>
    %231 = vector.broadcast %30 : vector<1x32xf32> to vector<16x32xf32>
    %232 = arith.mulf %230, %231 : vector<16x32xf32>
    %c0_75 = arith.constant 0 : index
    %c0_76 = arith.constant 0 : index
    %233 = vector.load %arg3[%c0_75, %c0_76] : memref<32x32xf32, #tpu.memory_space<vmem>>, vector<32x32xf32>
    %cst_77 = arith.constant dense<0.000000e+00> : vector<16x32xf32>
    %234 = tpu.matmul %232, %233, %cst_77 {dimension_numbers = #tpu.dot_dimension_numbers<[1], [0], [0], [1], [0, 0, 1, 1], [], []>} : vector<16x32xf32>, vector<32x32xf32>, vector<16x32xf32> -> vector<16x32xf32>
    %235 = arith.addf %208, %234 : vector<16x32xf32>
    %236 = vector.broadcast %37 : vector<1x32xf32> to vector<16x32xf32>
    %237 = arith.mulf %152, %236 : vector<16x32xf32>
    %cst_78 = arith.constant dense<0.000000e+00> : vector<16x16xf32>
    %238 = tpu.matmul %237, %153, %cst_78 {dimension_numbers = #tpu.dot_dimension_numbers<[1], [1], [0], [0], [0, 0, 1, 0], [], []>} : vector<16x32xf32>, vector<16x32xf32>, vector<16x16xf32> -> vector<16x16xf32>
    %cst_79 = arith.constant 0.176776692 : f32
    %239 = vector.broadcast %cst_79 : f32 to vector<16x16xf32>
    %240 = arith.mulf %238, %239 : vector<16x16xf32>
    %cst_80 = arith.constant -1.000000e+30 : f32
    %241 = vector.broadcast %cst_80 : f32 to vector<16x16xf32>
    %242 = arith.select %8, %240, %241 : vector<16x16xi1>, vector<16x16xf32>
    %cst_81 = arith.constant dense<0xFF800000> : vector<16xf32>
    %243 = vector.multi_reduction <maximumf>, %242, %cst_81 [1] : vector<16x16xf32> to vector<16xf32>
    %244 = vector.shape_cast %243 : vector<16xf32> to vector<16x1xf32>
    %245 = vector.broadcast %244 : vector<16x1xf32> to vector<16x16xf32>
    %246 = arith.subf %242, %245 : vector<16x16xf32>
    %247 = math.exp %246 : vector<16x16xf32>
    %cst_82 = arith.constant dense<0.000000e+00> : vector<16xf32>
    %248 = vector.multi_reduction <add>, %247, %cst_82 [1] : vector<16x16xf32> to vector<16xf32>
    %249 = vector.shape_cast %248 : vector<16xf32> to vector<16x1xf32>
    %250 = tpu.reciprocal %249 {approx = true} : vector<16x1xf32> -> vector<16x1xf32>
    %251 = arith.mulf %249, %250 : vector<16x1xf32>
    %cst_83 = arith.constant 2.000000e+00 : f32
    %252 = vector.broadcast %cst_83 : f32 to vector<16x1xf32>
    %253 = arith.subf %252, %251 : vector<16x1xf32>
    %254 = arith.mulf %250, %253 : vector<16x1xf32>
    %255 = vector.broadcast %254 : vector<16x1xf32> to vector<16x16xf32>
    %256 = arith.mulf %247, %255 : vector<16x16xf32>
    %cst_84 = arith.constant dense<0.000000e+00> : vector<16x32xf32>
    %257 = tpu.matmul %256, %154, %cst_84 {dimension_numbers = #tpu.dot_dimension_numbers<[1], [0], [0], [1], [0, 0, 1, 1], [], []>} : vector<16x16xf32>, vector<16x32xf32>, vector<16x32xf32> -> vector<16x32xf32>
    %258 = vector.broadcast %37 : vector<1x32xf32> to vector<16x32xf32>
    %259 = arith.mulf %257, %258 : vector<16x32xf32>
    %c0_85 = arith.constant 0 : index
    %c0_86 = arith.constant 0 : index
    %260 = vector.load %arg3[%c0_85, %c0_86] : memref<32x32xf32, #tpu.memory_space<vmem>>, vector<32x32xf32>
    %cst_87 = arith.constant dense<0.000000e+00> : vector<16x32xf32>
    %261 = tpu.matmul %259, %260, %cst_87 {dimension_numbers = #tpu.dot_dimension_numbers<[1], [0], [0], [1], [0, 0, 1, 1], [], []>} : vector<16x32xf32>, vector<32x32xf32>, vector<16x32xf32> -> vector<16x32xf32>
    %262 = arith.addf %235, %261 : vector<16x32xf32>
    %263 = tpu.concatenate %151, %262 in 0 : vector<16x32xf32>, vector<16x32xf32> -> vector<32x32xf32>
    %c0_88 = arith.constant 0 : index
    %c0_89 = arith.constant 0 : index
    %264 = vector.load %arg5[%c0_88, %c0_89] : memref<32x32xf32, #tpu.memory_space<vmem>>, vector<32x32xf32>
    tpu.vector_store %arg5[%c0_88, %c0_89], %263 {strides = array<i32>} : memref<32x32xf32, #tpu.memory_space<vmem>>, vector<32x32xf32>,
    return
  }
  func.func @transform_0(%arg0: i32) -> (i32, i32) {
    %c0_i32 = arith.constant 0 : i32
    %c0_i32_0 = arith.constant 0 : i32
    %c0_i32_1 = arith.constant 0 : i32
    return %c0_i32, %c0_i32_0 : i32, i32
  }
  func.func @transform_1(%arg0: i32) -> (i32, i32) {
    %c0_i32 = arith.constant 0 : i32
    %c0_i32_0 = arith.constant 0 : i32
    %c0_i32_1 = arith.constant 0 : i32
    return %c0_i32, %c0_i32_0 : i32, i32
  }
  func.func @transform_2(%arg0: i32) -> (i32, i32) {
    %c0_i32 = arith.constant 0 : i32
    %c0_i32_0 = arith.constant 0 : i32
    %c0_i32_1 = arith.constant 0 : i32
    return %c0_i32, %c0_i32_0 : i32, i32
  }
  func.func @transform_3(%arg0: i32) -> (i32, i32) {
    %c0_i32 = arith.constant 0 : i32
    %c0_i32_0 = arith.constant 0 : i32
    %c0_i32_1 = arith.constant 0 : i32
    return %c0_i32, %c0_i32_0 : i32, i32
  }
  func.func @transform_4(%arg0: i32) -> (i32, i32) {
    %c0_i32 = arith.constant 0 : i32
    %c0_i32_0 = arith.constant 0 : i32
    %c0_i32_1 = arith.constant 0 : i32
    return %c0_i32, %c0_i32_0 : i32, i32
  }
}

</mosaic_0001>

<bundles_post_ra>
// kernel: tpu_custom_call.1
= control target key start
LH: loop header
LB: loop body
LE: loop exit
PB: predicated region body
PF: predicated region fallthrough
CT: control target
= control target key end

     0   :  { %9 = vsyncpa [#allocation3], 0  ;;  %s3564_s0 = inlined_call_operand.hbm [shape: f32[32,32], index: 0, kind: input, shape index: {}]   ;;  %s3565_s1 = inlined_call_operand.hbm [shape: f32[32,96], index: 1, kind: input, shape index: {}]   ;;  %s3566_s2 = inlined_call_operand.hbm [shape: f32[32,32], index: 2, kind: input, shape index: {}]   ;;  %s3567_s3 = inlined_call_operand.vmem [shape: f32[1,32], index: 3, kind: input, shape index: {}]   ;;  %s3568_s4 = inlined_call_operand.hbm [shape: f32[32,32], index: 4, kind: output, shape index: {}]  }
   0x1   :  { %10 = vsyncpa [#allocation6], 0 }
   0x2   :  { %11 = vsyncpa [#allocation4], 0  ;;  %s3072_s15 = smov [#allocation5]   ;;  %s3073_s17 = smov [#allocation2]  }
   0x3   :  { %s29_s16 = sshll.u32 %s3072_s15, 4  ;;  %s17_s18 = sshll.u32 %s3073_s17, 4  ;;  %s30_s16 = int_to_ptr.vmem [resolvable:$true] %s29_s16  ;;  %s18_s18 = int_to_ptr.vmem [resolvable:$true] %s17_s18 }
   0x4   :  { %s2994_s19 = scalar_lea.vmem %s30_s16, 512  ;;  %p2999_p1 = scmp.lt.s32.totalorder %s30_s16, %s30_s16 }
   0x5   :  { %p2995_p0 = scmp.ne.s32.totalorder %s30_s16, %s2994_s19  ;;  %p3000_p2 = scmp.lt.s32.totalorder %s2994_s19, %s2994_s19 }
   0x7   :  { %p3001_p3 = por %p3000_p2, %p2999_p1 }
   0x9   :  { %p3002_p4 = pnand %p3001_p3, %p2995_p0 }
   0xb   :  { %3005 = shalt.err (!%p3002_p4)
}
   0xc   :  { %s3074_s20 = smov 128   ;;  %s3075_s21 = smov 8  }
   0xd   :  { %35 = dma.hbm_to_vmem [thread:$0]  %s3565_s1, 512, %s30_s16, [#allocation6], %s3074_s20, %s3074_s20, %s3075_s21  }
   0xe   :  { %s3014_s24 = scalar_lea.vmem %s18_s18, 512  ;;  %p3019_p6 = scmp.lt.s32.totalorder %s18_s18, %s18_s18 }
   0xf   :  { %p3015_p5 = scmp.ne.s32.totalorder %s18_s18, %s3014_s24  ;;  %p3020_p7 = scmp.lt.s32.totalorder %s3014_s24, %s3014_s24 }
  0x11   :  { %p3021_p8 = por %p3020_p7, %p3019_p6 }
  0x13   :  { %p3022_p9 = pnand %p3021_p8, %p3015_p5 }
  0x15   :  { %3025 = shalt.err (!%p3022_p9)
}
  0x16   :  { %23 = dma.hbm_to_vmem [thread:$0]  %s3564_s0, 512, %s18_s18, [#allocation3], %s3074_s20, %s3074_s20, %s3075_s21  }
  0x17   :  { %s3076_s27 = smov [#allocation7]  }
  0x18   :  { %s41_s28 = sshll.u32 %s3076_s27, 4  ;;  %s42_s28 = int_to_ptr.vmem [resolvable:$true] %s41_s28 }
  0x19   :  { %s3034_s29 = scalar_lea.vmem %s42_s28, 512  ;;  %p3039_p11 = scmp.lt.s32.totalorder %s42_s28, %s42_s28 }
  0x1a   :  { %p3035_p10 = scmp.ne.s32.totalorder %s42_s28, %s3034_s29  ;;  %p3040_p12 = scmp.lt.s32.totalorder %s3034_s29, %s3034_s29 }
  0x1c   :  { %p3041_p13 = por %p3040_p12, %p3039_p11 }
  0x1e   :  { %p3042_p0 = pnand %p3041_p13, %p3035_p10 }
  0x20   :  { %3045 = shalt.err (!%p3042_p0)
}
  0x21   :  { %47 = dma.hbm_to_vmem [thread:$0]  %s3566_s2, 512, %s42_s28, [#allocation6], %s3074_s20, %s3074_s20, %s3075_s21  }
  0x22   :  { %3066 = dma.done.wait [#allocation3], 512  }
  0x23   :  { %3067 = vsyncadd [#allocation3], 4294966784 }
  0x24   :  { %3068 = dma.done.wait [#allocation6], 1024  }
  0x25   :  { %3069 = vsyncadd [#allocation6], 4294966272  ;;  %vm67_vm0 = vcmask 261120   ;;  %v66_v0 = vld [vmem:[#allocation5 + $0x18] sm:$0xff]  ;;  %v65_v1 = vld [vmem:[#allocation5 + $0x10] sm:$0xff]  ;;  %v165_v6 = vlaneseq  ;;  %s3077_s0 = smov 96  }
  0x26   :  { %2699 = vmatprep.subr.mxu0 %v66_v0  ;;  %v59_v2 = vld [vmem:[#allocation2] sm:$0xff]  ;;  %v64_v3 = vld [vmem:[#allocation5 + $0x8] sm:$0xff]  ;;  %v3078_v10 = vmov 0.0   ;;  %vm296_vm4 = vcmask 130048   ;;  %s3079_s2 = smov 64   ;;  %v3180_v38 = vld [vmem:[#allocation7 + $0x18] sm:$0xff] }
  0x27   :  { %2700 = vmatpush3.msra.mxu0 %v66_v0  ;;  %2707 = vmatprep.mubr.msk.f32.mxu0 %vm67_vm0, %v59_v2  ;;  %v63_v4 = vld [vmem:[#allocation5] sm:$0xff]  ;;  %v60_v5 = vld [vmem:[#allocation2 + $0x8] sm:$0xff]  ;;  %v3126_v7 = vand.u32 127, %v165_v6  ;;  %v166_v16 = vshrl.u32 %v165_v6, 7  ;;  %v3182_v39 = vld [vmem:[#allocation7 + $0x10] sm:$0xff] }
  0x28   :  { %2701 = vmatprep.subr.mxu0 %v65_v1  ;;  %v61_v57 = vld [vmem:[#allocation2 + $0x10] sm:$0xff]  ;;  %v3223_v58 = vld [vmem:[#allocation7 + $0x8] sm:$0xff]  ;;  %v62_v59 = vld [vmem:[#allocation2 + $0x18] sm:$0xff] }
  0x29   :  { %2702 = vmatpush3.msra.mxu0 %v65_v1  ;;  %vm173_vm1 = vcmp.lt.s32.totalorder %v3126_v7, 8  ;;  %v167_v18 = vadd.s32 8, %v166_v16  ;;  %vm3159_vm2 = vcmp.ge.s32.totalorder %v166_v16, %v3126_v7  ;;  %vm177_vm5 = vcmp.ge.s32.totalorder %v3126_v7, 8  ;;  %v3228_v60 = vld [vmem:[#allocation7] sm:$0xff] }
  0x2a   :  { %2703 = vmatprep.subr.mxu0 %v64_v3  ;;  %v3136_v11 = vsel %vm173_vm1, 1.0, %v3078_v10  ;;  %vm178_vm6 = vcmp.lt.s32.totalorder %v3126_v7, 16  ;;  %vm182_vm8 = vcmp.ge.s32.totalorder %v3126_v7, 16  ;;  %vm183_vm9 = vcmp.lt.s32.totalorder %v3126_v7, 24 }
  0x2b   :  { %2704 = vmatpush3.msra.mxu0 %v64_v3  ;;  %vm3164_vm3 = vcmp.ge.s32.totalorder %v167_v18, %v3126_v7  ;;  %vm179_vm7 = vmand %vm177_vm5, %vm178_vm6  ;;  %vm187_vm11 = vcmp.ge.s32.totalorder %v3126_v7, 24  ;;  %vm188_vm12 = vcmp.lt.s32.totalorder %v3126_v7, 32 }
  0x2c   :  { %2705 = vmatprep.subr.mxu0 %v63_v4  ;;  %v3202_v53 = vsel %vm179_vm7, 1.0, %v3078_v10  ;;  %vm184_vm10 = vmand %vm182_vm8, %vm183_vm9 }
  0x2d   :  { %2706 = vmatpush3.msra.mxu0 %v63_v4  ;;  %vm189_vm13 = vmand %vm187_vm11, %vm188_vm12 }
  0x2e   :  { %2708 = vmatmul.mubr.msk.f32.vlgmr.msra.gmra.mxu0 %vm67_vm0, %v60_v5  ;;  %2727 = vmatprep.subr.mxu0 %v3180_v38 }
  0x2f   :  { %2728 = vmatpush3.msra.mxu0 %v3180_v38  ;;  %2710 = vmatprep.mubr.msk.f32.mxu0 %vm67_vm0, %v61_v57 }
  0x30   :  { %2729 = vmatprep.subr.mxu0 %v3182_v39 }
  0x31   :  { %2730 = vmatpush3.msra.mxu0 %v3182_v39 }
  0x32   :  { %2731 = vmatprep.subr.mxu0 %v3223_v58  ;;  %2711 = vmatmul.mubr.msk.f32.gmra.mxu0 %vm67_vm0, %v62_v59 }
  0x33   :  { %2732 = vmatpush3.msra.mxu0 %v3223_v58 }
  0x34   :  { %2733 = vmatprep.subr.mxu0 %v3228_v60 }
  0x35   :  { %2734 = vmatpush3.msra.mxu0 %v3228_v60 }
  0x36   :  { %2752 = vmatprep.subr.mxu0 %v3180_v38 }
  0xee   :  { %v3129_v8 = vpop.f32.mrf.mxu0 }
  0xef   :  { %205 = vrot.lane.b32.xlu0 %v3129_v8, %s3077_s0  ;;  %v200_v15 = vmul.f32 %v3129_v8, %v3136_v11  ;;  %v502_v56 = vmul.f32 %v3129_v8, %v3202_v53 }
  0xf0   :  { %v3133_v9 = vpop.f32.mrf.mxu0 }
  0xf1   :  { %v199_v12 = vmul.f32 %v3136_v11, %v3133_v9  ;;  %v501_v55 = vmul.f32 %v3202_v53, %v3133_v9 }
  0xf3   :  { %203 = vrot.lane.b32.xlu0 %v3133_v9, %s3077_s0  ;;  %2717 = vmatprep.mubr.msk.f32.mxu1 %vm67_vm0, %v199_v12 }
 0x161   :  { %v3143_v13 = vpop.permute.xlu0 %205 }
 0x162   :  { %2713 = vmatprep.subr.msk.mxu1 %vm67_vm0, %v3143_v13 }
 0x163   :  { %2714 = vmatpush3.xpose.msk.msra.mxu1 %vm67_vm0, %v3143_v13 }
 0x165   :  { %v3149_v14 = vpop.permute.xlu0 %203 }
 0x166   :  { %2715 = vmatprep.subr.msk.mxu1 %vm67_vm0, %v3149_v14 }
 0x167   :  { %2716 = vmatpush3.xpose.msk.msra.mxu1 %vm67_vm0, %v3149_v14 }
 0x16a   :  { %2718 = vmatmul.mubr.msk.f32.vlgmr.msra.gmra.mxu1 %vm67_vm0, %v200_v15 }
 0x22a   :  { %v2719_v17 = vpop.f32.mrf.mxu1 }
 0x22b   :  { %v293_v21 = vmul.f32 0.17677669, %v2719_v17 }
 0x22c   :  { %v283_v19 = vpop.f32.mrf.mxu1 }
 0x22d   :  { %v292_v22 = vmul.f32 0.17677669, %v283_v19  ;;  %v295_v26 = vsel %vm3164_vm3, %v293_v21, -1e+30 }
 0x22e   :  { %v300_v27 = vsel %vm296_vm4, %v295_v26, -inf }
 0x22f   :  { %v294_v24 = vsel %vm3159_vm2, %v292_v22, -1e+30 }
 0x230   :  { %v297_v25 = vsel %vm296_vm4, %v294_v24, -inf }
 0x231   :  { %298 = vmax.xlane.f32.xlu1 %v297_v25 }
 0x235   :  { %301 = vmax.xlane.f32.xlu1 %v300_v27 }
 0x2ba   :  { %v299_v28 = vpop.xlane.xlu1 %298 }
 0x2bb   :  { %v303_v29 = vsub.f32 %v294_v24, %v299_v28 }
 0x2bd   :  { %v305_v30 = vmul.f32 1.442695, %v303_v29 }
 0x2be   :  { %v302_v31 = vpop.xlane.xlu1 %301 }
 0x2bf   :  { %2922 = vpow2.f32 %v305_v30  ;;  %v304_v32 = vsub.f32 %v295_v26, %v302_v31 }
 0x2c1   :  { %v307_v33 = vmul.f32 1.442695, %v304_v32 }
 0x2c3   :  { %2924 = vpow2.f32 %v307_v33 }
 0x2cc   :  { %v2923_v34 = vpop.eup %2922 }
 0x2cd   :  { %v309_v35 = vsel %vm296_vm4, %v2923_v34, 0.0 }
 0x2ce   :  { %310 = vadd.xlane.f32.xlu0 %v309_v35 }
 0x2d0   :  { %v2925_v36 = vpop.eup %2924 }
 0x2d1   :  { %v312_v37 = vsel %vm296_vm4, %v2925_v36, 0.0 }
 0x2d2   :  { %313 = vadd.xlane.f32.xlu1 %v312_v37 }
 0x2e3   :  { %327 = vrot.lane.b32.xlu1 %v3129_v8, %s3079_s2 }
 0x2e7   :  { %325 = vrot.lane.b32.xlu1 %v3133_v9, %s3079_s2 }
 0x357   :  { %v311_v40 = vpop.xlane.xlu0 %310 }
 0x358   :  { %2926 = vrcp.f32 %v311_v40 }
 0x35b   :  { %v314_v41 = vpop.xlane.xlu1 %313 }
 0x35c   :  { %2928 = vrcp.f32 %v314_v41 }
 0x35f   :  { %v3188_v42 = vpop.permute.xlu1 %327 }
 0x360   :  { %2720 = vmatprep.subr.mxu1 %v3188_v42 }
 0x361   :  { %2721 = vmatpush3.msra.mxu1 %v3188_v42 }
 0x363   :  { %v3192_v43 = vpop.permute.xlu1 %325 }
 0x364   :  { %2722 = vmatprep.subr.mxu1 %v3192_v43 }
 0x365   :  { %v2927_v44 = vpop.eup %2926  ;;  %2723 = vmatpush3.msra.mxu1 %v3192_v43 }
 0x366   :  { %v317_v45 = vmul.f32 %v2927_v44, %v311_v40  ;;  %2738 = vmatprep.subr.msk.mxu1 %vm67_vm0, %v3143_v13 }
 0x368   :  { %v319_v46 = vsub.f32 2.0, %v317_v45 }
 0x369   :  { %v2929_v47 = vpop.eup %2928 }
 0x36a   :  { %v321_v48 = vmul.f32 %v2927_v44, %v319_v46  ;;  %v318_v49 = vmul.f32 %v2929_v47, %v314_v41  ;;  %v3258_v41 = vsel %vm184_vm10, 1.0, %v3078_v10 }
 0x36b   :  { %v782_v45 = vmul.f32 %v3258_v41, %v3133_v9  ;;  %v783_v46 = vmul.f32 %v3129_v8, %v3258_v41 }
 0x36c   :  { %v323_v50 = vmul.f32 %v2923_v34, %v321_v48  ;;  %v320_v51 = vsub.f32 2.0, %v318_v49 }
 0x36e   :  { %v322_v52 = vmul.f32 %v2929_v47, %v320_v51  ;;  %2724 = vmatprep.mubr.msk.f32.mxu1 %vm296_vm4, %v323_v50 }
 0x370   :  { %v324_v54 = vmul.f32 %v2925_v36, %v322_v52 }
 0x372   :  { %2725 = vmatmul.mubr.msk.f32.vlgmr.msra.gmra.mxu1 %vm296_vm4, %v324_v54 }
 0x373   :  { %2739 = vmatpush3.xpose.msk.msra.mxu1 %vm67_vm0, %v3143_v13  ;;  %2742 = vmatprep.mubr.msk.f32.mxu1 %vm67_vm0, %v501_v55 }
 0x374   :  { %2740 = vmatprep.subr.msk.mxu1 %vm67_vm0, %v3149_v14 }
 0x377   :  { %2741 = vmatpush3.xpose.msk.msra.mxu1 %vm67_vm0, %v3149_v14 }
 0x378   :  { %2745 = vmatprep.subr.mxu1 %v3188_v42 }
 0x37a   :  { %2743 = vmatmul.mubr.msk.f32.vlgmr.msra.gmra.mxu1 %vm67_vm0, %v502_v56 }
 0x37b   :  { %2746 = vmatpush3.msra.mxu1 %v3188_v42 }
 0x37c   :  { %2747 = vmatprep.subr.mxu1 %v3192_v43 }
 0x37d   :  { %2748 = vmatpush3.msra.mxu1 %v3192_v43 }
 0x37e   :  { %2763 = vmatprep.subr.msk.mxu1 %vm67_vm0, %v3143_v13 }
 0x432   :  { %v2726_v61 = vpop.f32.mrf.mxu1 }
 0x433   :  { %v413_v0 = vmul.f32 %v2726_v61, %v3136_v11 }
 0x434   :  { %v403_v62 = vpop.f32.mrf.mxu1 }
 0x435   :  { %v412_v63 = vmul.f32 %v3136_v11, %v403_v62 }
 0x437   :  { %2735 = vmatprep.mubr.msk.f32.mxu0 %vm67_vm0, %v412_v63 }
 0x438   :  { %2736 = vmatmul.mubr.msk.f32.vlgmr.msra.gmra.mxu0 %vm67_vm0, %v413_v0 }
 0x439   :  { %2753 = vmatpush3.msra.mxu0 %v3180_v38 }
 0x43a   :  { %v2744_v1 = vpop.f32.mrf.mxu1  ;;  %2754 = vmatprep.subr.mxu0 %v3182_v39 }
 0x43b   :  { %v585_v2 = vmul.f32 0.17677669, %v2744_v1  ;;  %2755 = vmatpush3.msra.mxu0 %v3182_v39 }
 0x43c   :  { %v575_v3 = vpop.f32.mrf.mxu1  ;;  %2756 = vmatprep.subr.mxu0 %v3223_v58 }
 0x43d   :  { %v584_v4 = vmul.f32 0.17677669, %v575_v3  ;;  %2757 = vmatpush3.msra.mxu0 %v3223_v58  ;;  %v587_v5 = vsel %vm3164_vm3, %v585_v2, -1e+30 }
 0x43e   :  { %2758 = vmatprep.subr.mxu0 %v3228_v60  ;;  %v591_v6 = vsel %vm296_vm4, %v587_v5, -inf }
 0x43f   :  { %592 = vmax.xlane.f32.xlu0 %v591_v6  ;;  %2759 = vmatpush3.msra.mxu0 %v3228_v60  ;;  %v586_v12 = vsel %vm3159_vm2, %v584_v4, -1e+30 }
 0x440   :  { %2770 = vmatprep.subr.mxu0 %v3188_v42  ;;  %v588_v15 = vsel %vm296_vm4, %v586_v12, -inf }
 0x441   :  { %589 = vmax.xlane.f32.xlu1 %v588_v15  ;;  %v3299_v15 = vpop.f32.mrf.mxu0 }
 0x4c8   :  { %v593_v16 = vpop.xlane.xlu0 %592 }
 0x4c9   :  { %v595_v17 = vsub.f32 %v587_v5, %v593_v16  ;;  %v3301_v16 = vpop.f32.mrf.mxu0 }
 0x4ca   :  { %v590_v18 = vpop.xlane.xlu1 %589 }
 0x4cb   :  { %v594_v19 = vsub.f32 %v586_v12, %v590_v18  ;;  %v598_v21 = vmul.f32 1.442695, %v595_v17  ;;  %v3306_v18 = vld [vmem:[%s3567_s3] ss:$0 sm:$0xff]  ;;  %s3080_s3 = smov [#allocation8]  }
 0x4cc   :  { %s2493_s7 = sshll.u32 %s3080_s3, 4  ;;  %s2494_s7 = int_to_ptr.vmem [resolvable:$true] %s2493_s7 }
 0x4cd   :  { %v596_v22 = vmul.f32 1.442695, %v594_v19  ;;  %s3046_s8 = scalar_lea.vmem %s2494_s7, 512  ;;  %p3051_p2 = scmp.lt.s32.totalorder %s2494_s7, %s2494_s7 }
 0x4ce   :  { %p3047_p1 = scmp.ne.s32.totalorder %s2494_s7, %s3046_s8  ;;  %p3052_p3 = scmp.lt.s32.totalorder %s3046_s8, %s3046_s8 }
 0x4cf   :  { %2930 = vpow2.f32 %v596_v22 }
 0x4d0   :  { %2932 = vpow2.f32 %v598_v21  ;;  %p3053_p4 = por %p3052_p3, %p3051_p2 }
 0x4d2   :  { %p3054_p5 = pnand %p3053_p4, %p3047_p1 }
 0x4dc   :  { %v2931_v24 = vpop.eup %2930 }
 0x4dd   :  { %v600_v25 = vsel %vm296_vm4, %v2931_v24, 0.0  ;;  %v2933_v26 = vpop.eup %2932 }
 0x4de   :  { %601 = vadd.xlane.f32.xlu0 %v600_v25  ;;  %v603_v27 = vsel %vm296_vm4, %v2933_v26, 0.0 }
 0x4e2   :  { %604 = vadd.xlane.f32.xlu0 %v603_v27 }
 0x4f8   :  { %v2737_v17 = vpop.f32.mrf.mxu0 }
 0x4f9   :  { %v500_v21 = vadd.f32 %v2737_v17, %v3306_v18 }
 0x4fa   :  { %v3308_v19 = vpop.f32.mrf.mxu0 }
 0x567   :  { %v602_v28 = vpop.xlane.xlu0 %601 }
 0x568   :  { %2934 = vrcp.f32 %v602_v28 }
 0x56b   :  { %v605_v29 = vpop.xlane.xlu0 %604 }
 0x56c   :  { %2936 = vrcp.f32 %v605_v29 }
 0x575   :  { %v2935_v30 = vpop.eup %2934 }
 0x576   :  { %v608_v31 = vmul.f32 %v2935_v30, %v602_v28 }
 0x578   :  { %v610_v32 = vsub.f32 2.0, %v608_v31 }
 0x579   :  { %v2937_v33 = vpop.eup %2936 }
 0x57a   :  { %v612_v34 = vmul.f32 %v2935_v30, %v610_v32  ;;  %v609_v35 = vmul.f32 %v2937_v33, %v605_v29 }
 0x57c   :  { %v614_v36 = vmul.f32 %v2931_v24, %v612_v34  ;;  %v611_v37 = vsub.f32 2.0, %v609_v35 }
 0x57e   :  { %v613_v40 = vmul.f32 %v2937_v33, %v611_v37  ;;  %2749 = vmatprep.mubr.msk.f32.mxu1 %vm296_vm4, %v614_v36  ;;  %v3317_v36 = vsel %vm189_vm13, 1.0, %v3078_v10 }
 0x57f   :  { %v1064_v7 = vmul.f32 %v3129_v8, %v3317_v36 }
 0x580   :  { %v615_v44 = vmul.f32 %v2933_v26, %v613_v40  ;;  %v1063_v40 = vmul.f32 %v3317_v36, %v3133_v9 }
 0x582   :  { %2750 = vmatmul.mubr.msk.f32.vlgmr.msra.gmra.mxu1 %vm296_vm4, %v615_v44 }
 0x583   :  { %2764 = vmatpush3.xpose.msk.msra.mxu1 %vm67_vm0, %v3143_v13  ;;  %2767 = vmatprep.mubr.msk.f32.mxu1 %vm67_vm0, %v782_v45 }
 0x584   :  { %2765 = vmatprep.subr.msk.mxu1 %vm67_vm0, %v3149_v14 }
 0x587   :  { %2766 = vmatpush3.xpose.msk.msra.mxu1 %vm67_vm0, %v3149_v14 }
 0x588   :  { %2777 = vmatprep.subr.mxu1 %v3180_v38 }
 0x58a   :  { %2768 = vmatmul.mubr.msk.f32.vlgmr.msra.gmra.mxu1 %vm67_vm0, %v783_v46 }
 0x58b   :  { %2778 = vmatpush3.msra.mxu1 %v3180_v38 }
 0x58c   :  { %2779 = vmatprep.subr.mxu1 %v3182_v39 }
 0x58d   :  { %2780 = vmatpush3.msra.mxu1 %v3182_v39 }
 0x58e   :  { %2781 = vmatprep.subr.mxu1 %v3223_v58 }
 0x58f   :  { %2782 = vmatpush3.msra.mxu1 %v3223_v58 }
 0x590   :  { %2783 = vmatprep.subr.mxu1 %v3228_v60 }
 0x591   :  { %2784 = vmatpush3.msra.mxu1 %v3228_v60 }
 0x592   :  { %2795 = vmatprep.subr.mxu1 %v3188_v42 }
 0x642   :  { %v2751_v47 = vpop.f32.mrf.mxu1 }
 0x643   :  { %v698_v50 = vmul.f32 %v2751_v47, %v3202_v53 }
 0x644   :  { %v688_v48 = vpop.f32.mrf.mxu1 }
 0x645   :  { %v697_v49 = vmul.f32 %v3202_v53, %v688_v48 }
 0x647   :  { %2760 = vmatprep.mubr.msk.f32.mxu0 %vm67_vm0, %v697_v49 }
 0x648   :  { %2761 = vmatmul.mubr.msk.f32.vlgmr.msra.gmra.mxu0 %vm67_vm0, %v698_v50 }
 0x649   :  { %2771 = vmatpush3.msra.mxu0 %v3188_v42 }
 0x64a   :  { %v2769_v51 = vpop.f32.mrf.mxu1  ;;  %2772 = vmatprep.subr.mxu0 %v3192_v43 }
 0x64b   :  { %2773 = vmatpush3.msra.mxu0 %v3192_v43  ;;  %v866_v54 = vmul.f32 0.17677669, %v2769_v51 }
 0x64c   :  { %v856_v52 = vpop.f32.mrf.mxu1  ;;  %2788 = vmatprep.subr.msk.mxu0 %vm67_vm0, %v3143_v13 }
 0x64d   :  { %v865_v55 = vmul.f32 0.17677669, %v856_v52  ;;  %v868_v59 = vsel %vm3164_vm3, %v866_v54, -1e+30 }
 0x64e   :  { %v872_v61 = vsel %vm296_vm4, %v868_v59, -inf }
 0x64f   :  { %v867_v56 = vsel %vm3159_vm2, %v865_v55, -1e+30 }
 0x650   :  { %v869_v57 = vsel %vm296_vm4, %v867_v56, -inf }
 0x651   :  { %870 = vmax.xlane.f32.xlu0 %v869_v57 }
 0x655   :  { %873 = vmax.xlane.f32.xlu0 %v872_v61 }
 0x6da   :  { %v871_v62 = vpop.xlane.xlu0 %870 }
 0x6db   :  { %v875_v63 = vsub.f32 %v867_v56, %v871_v62 }
 0x6dd   :  { %v877_v0 = vmul.f32 1.442695, %v875_v63 }
 0x6de   :  { %v874_v1 = vpop.xlane.xlu0 %873 }
 0x6df   :  { %2938 = vpow2.f32 %v877_v0  ;;  %v876_v2 = vsub.f32 %v868_v59, %v874_v1 }
 0x6e1   :  { %v879_v3 = vmul.f32 1.442695, %v876_v2 }
 0x6e3   :  { %2940 = vpow2.f32 %v879_v3 }
 0x6ec   :  { %v2939_v4 = vpop.eup %2938 }
 0x6ed   :  { %v881_v5 = vsel %vm296_vm4, %v2939_v4, 0.0 }
 0x6ee   :  { %882 = vadd.xlane.f32.xlu0 %v881_v5 }
 0x6f0   :  { %v2941_v6 = vpop.eup %2940 }
 0x6f1   :  { %v884_v12 = vsel %vm296_vm4, %v2941_v6, 0.0 }
 0x6f2   :  { %885 = vadd.xlane.f32.xlu0 %v884_v12 }
 0x708   :  { %v2762_v22 = vpop.f32.mrf.mxu0 }
 0x709   :  { %v3311_v24 = vadd.f32 %v2762_v22, %v500_v21 }
 0x70a   :  { %v3340_v9 = vpop.f32.mrf.mxu0 }
 0x777   :  { %v883_v25 = vpop.xlane.xlu0 %882 }
 0x778   :  { %2942 = vrcp.f32 %v883_v25 }
 0x77b   :  { %v886_v26 = vpop.xlane.xlu0 %885 }
 0x77c   :  { %2944 = vrcp.f32 %v886_v26 }
 0x785   :  { %v2943_v27 = vpop.eup %2942 }
 0x786   :  { %v889_v28 = vmul.f32 %v2943_v27, %v883_v25 }
 0x788   :  { %v891_v29 = vsub.f32 2.0, %v889_v28 }
 0x789   :  { %v2945_v30 = vpop.eup %2944 }
 0x78a   :  { %v893_v31 = vmul.f32 %v2943_v27, %v891_v29  ;;  %v890_v32 = vmul.f32 %v2945_v30, %v886_v26  ;;  %v1344_v27 = vmul.f32 %v3136_v11, %v3301_v16  ;;  %v1345_v29 = vmul.f32 %v3299_v15, %v3136_v11 }
 0x78c   :  { %v895_v33 = vmul.f32 %v2939_v4, %v893_v31  ;;  %v892_v34 = vsub.f32 2.0, %v890_v32 }
 0x78e   :  { %v894_v35 = vmul.f32 %v2945_v30, %v892_v34  ;;  %2774 = vmatprep.mubr.msk.f32.mxu0 %vm296_vm4, %v895_v33 }
 0x790   :  { %v896_v37 = vmul.f32 %v2941_v6, %v894_v35 }
 0x792   :  { %2775 = vmatmul.mubr.msk.f32.vlgmr.msra.gmra.mxu0 %vm296_vm4, %v896_v37 }
 0x793   :  { %2789 = vmatpush3.xpose.msk.msra.mxu0 %vm67_vm0, %v3143_v13  ;;  %2792 = vmatprep.mubr.msk.f32.mxu0 %vm67_vm0, %v1063_v40 }
 0x794   :  { %2790 = vmatprep.subr.msk.mxu0 %vm67_vm0, %v3149_v14 }
 0x797   :  { %2791 = vmatpush3.xpose.msk.msra.mxu0 %vm67_vm0, %v3149_v14 }
 0x798   :  { %2802 = vmatprep.subr.mxu0 %v3180_v38 }
 0x79a   :  { %2793 = vmatmul.mubr.msk.f32.vlgmr.msra.gmra.mxu0 %vm67_vm0, %v1064_v7 }
 0x79b   :  { %2803 = vmatpush3.msra.mxu0 %v3180_v38 }
 0x79c   :  { %2804 = vmatprep.subr.mxu0 %v3182_v39 }
 0x79d   :  { %2805 = vmatpush3.msra.mxu0 %v3182_v39 }
 0x79e   :  { %2806 = vmatprep.subr.mxu0 %v3223_v58 }
 0x79f   :  { %2807 = vmatpush3.msra.mxu0 %v3223_v58 }
 0x7a0   :  { %2808 = vmatprep.subr.mxu0 %v3228_v60 }
 0x7a1   :  { %2809 = vmatpush3.msra.mxu0 %v3228_v60 }
 0x852   :  { %v2776_v8 = vpop.f32.mrf.mxu0 }
 0x853   :  { %v979_v14 = vmul.f32 %v2776_v8, %v3258_v41 }
 0x854   :  { %v969_v10 = vpop.f32.mrf.mxu0 }
 0x855   :  { %v978_v13 = vmul.f32 %v3258_v41, %v969_v10 }
 0x857   :  { %2785 = vmatprep.mubr.msk.f32.mxu1 %vm67_vm0, %v978_v13 }
 0x858   :  { %2786 = vmatmul.mubr.msk.f32.vlgmr.msra.gmra.mxu1 %vm67_vm0, %v979_v14 }
 0x859   :  { %2796 = vmatpush3.msra.mxu1 %v3188_v42 }
 0x85a   :  { %v2794_v44 = vpop.f32.mrf.mxu0  ;;  %2797 = vmatprep.subr.mxu1 %v3192_v43 }
 0x85b   :  { %v1147_v45 = vmul.f32 0.17677669, %v2794_v44  ;;  %2798 = vmatpush3.msra.mxu1 %v3192_v43 }
 0x85c   :  { %v1137_v46 = vpop.f32.mrf.mxu0 }
 0x85d   :  { %v1146_v47 = vmul.f32 0.17677669, %v1137_v46  ;;  %v1149_v48 = vsel %vm3164_vm3, %v1147_v45, -1e+30 }
 0x85e   :  { %v1153_v49 = vsel %vm296_vm4, %v1149_v48, -inf }
 0x85f   :  { %1154 = vmax.xlane.f32.xlu1 %v1153_v49  ;;  %v1148_v50 = vsel %vm3159_vm2, %v1146_v47, -1e+30 }
 0x860   :  { %v1150_v51 = vsel %vm296_vm4, %v1148_v50, -inf }
 0x861   :  { %1151 = vmax.xlane.f32.xlu0 %v1150_v51 }
 0x8e8   :  { %v1155_v42 = vpop.xlane.xlu1 %1154 }
 0x8e9   :  { %v1157_v52 = vsub.f32 %v1149_v48, %v1155_v42 }
 0x8ea   :  { %v1152_v54 = vpop.xlane.xlu0 %1151 }
 0x8eb   :  { %v1160_v55 = vmul.f32 1.442695, %v1157_v52  ;;  %v1156_v56 = vsub.f32 %v1148_v50, %v1152_v54  ;;  %v499_v54 = vadd.f32 %v3306_v18, %v3308_v19 }
 0x8ed   :  { %2946 = vpow2.f32 %v1160_v55  ;;  %v1158_v43 = vmul.f32 1.442695, %v1156_v56  ;;  %v780_v55 = vadd.f32 %v3340_v9, %v499_v54 }
 0x8ef   :  { %2948 = vpow2.f32 %v1158_v43 }
 0x8fa   :  { %v2947_v57 = vpop.eup %2946 }
 0x8fb   :  { %v1165_v59 = vsel %vm296_vm4, %v2947_v57, 0.0 }
 0x8fc   :  { %v2949_v61 = vpop.eup %2948  ;;  %1166 = vadd.xlane.f32.xlu1 %v1165_v59 }
 0x8fd   :  { %v1162_v62 = vsel %vm296_vm4, %v2949_v61, 0.0 }
 0x8fe   :  { %1163 = vadd.xlane.f32.xlu0 %v1162_v62 }
 0x90d   :  { %1348 = vrot.lane.b32.xlu1 %v3301_v16, %s3077_s0 }
 0x914   :  { %1350 = vrot.lane.b32.xlu0 %v3299_v15, %s3077_s0 }
 0x918   :  { %v2787_v63 = vpop.f32.mrf.mxu1 }
 0x919   :  { %v3362_v0 = vadd.f32 %v2787_v63, %v3311_v24 }
 0x91a   :  { %v1052_v30 = vpop.f32.mrf.mxu1 }
 0x91b   :  { %v1061_v43 = vadd.f32 %v1052_v30, %v780_v55 }
 0x985   :  { %v1167_v1 = vpop.xlane.xlu1 %1166 }
 0x986   :  { %2950 = vrcp.f32 %v1167_v1 }
 0x987   :  { %v1164_v2 = vpop.xlane.xlu0 %1163 }
 0x988   :  { %2952 = vrcp.f32 %v1164_v2 }
 0x989   :  { %v3372_v28 = vpop.permute.xlu1 %1348 }
 0x98b   :  { %v3364_v3 = vpop.permute.xlu0 %1350 }
 0x98c   :  { %2813 = vmatprep.subr.msk.mxu1 %vm67_vm0, %v3364_v3 }
 0x993   :  { %v2951_v4 = vpop.eup %2950 }
 0x994   :  { %v1171_v5 = vmul.f32 %v2951_v4, %v1167_v1 }
 0x995   :  { %v2953_v6 = vpop.eup %2952 }
 0x996   :  { %v1173_v12 = vsub.f32 2.0, %v1171_v5  ;;  %v1170_v17 = vmul.f32 %v2953_v6, %v1164_v2 }
 0x998   :  { %v1172_v21 = vsub.f32 2.0, %v1170_v17  ;;  %v1175_v22 = vmul.f32 %v2951_v4, %v1173_v12 }
 0x99a   :  { %v1174_v25 = vmul.f32 %v2953_v6, %v1172_v21  ;;  %v1177_v24 = vmul.f32 %v2947_v57, %v1175_v22 }
 0x99c   :  { %v1176_v26 = vmul.f32 %v2949_v61, %v1174_v25  ;;  %v1641_v25 = vmul.f32 %v3202_v53, %v3301_v16 }
 0x99e   :  { %2799 = vmatprep.mubr.msk.f32.mxu1 %vm296_vm4, %v1176_v26  ;;  %v1642_v26 = vmul.f32 %v3299_v15, %v3202_v53 }
 0x99f   :  { %2800 = vmatmul.mubr.msk.f32.vlgmr.msra.gmra.mxu1 %vm296_vm4, %v1177_v24 }
 0x9a0   :  { %2814 = vmatpush3.xpose.msk.msra.mxu1 %vm67_vm0, %v3364_v3  ;;  %2817 = vmatprep.mubr.msk.f32.mxu1 %vm67_vm0, %v1344_v27 }
 0x9a1   :  { %2815 = vmatprep.subr.msk.mxu1 %vm67_vm0, %v3372_v28 }
 0x9a4   :  { %2816 = vmatpush3.xpose.msk.msra.mxu1 %vm67_vm0, %v3372_v28 }
 0x9a5   :  { %2827 = vmatprep.subr.mxu1 %v3180_v38 }
 0x9a7   :  { %2818 = vmatmul.mubr.msk.f32.vlgmr.msra.gmra.mxu1 %vm67_vm0, %v1345_v29 }
 0x9a8   :  { %2828 = vmatpush3.msra.mxu1 %v3180_v38 }
 0x9a9   :  { %2829 = vmatprep.subr.mxu1 %v3182_v39 }
 0x9aa   :  { %2830 = vmatpush3.msra.mxu1 %v3182_v39 }
 0x9ab   :  { %2831 = vmatprep.subr.mxu1 %v3223_v58 }
 0x9ac   :  { %2832 = vmatpush3.msra.mxu1 %v3223_v58 }
 0x9ad   :  { %2833 = vmatprep.subr.mxu1 %v3228_v60 }
 0x9ae   :  { %2834 = vmatpush3.msra.mxu1 %v3228_v60 }
 0xa5f   :  { %v2801_v31 = vpop.f32.mrf.mxu1 }
 0xa60   :  { %v1260_v34 = vmul.f32 %v2801_v31, %v3317_v36 }
 0xa61   :  { %v1250_v32 = vpop.f32.mrf.mxu1 }
 0xa62   :  { %v1259_v33 = vmul.f32 %v3317_v36, %v1250_v32 }
 0xa64   :  { %2810 = vmatprep.mubr.msk.f32.mxu0 %vm67_vm0, %v1259_v33 }
 0xa65   :  { %2811 = vmatmul.mubr.msk.f32.vlgmr.msra.gmra.mxu0 %vm67_vm0, %v1260_v34 }
 0xa67   :  { %v2819_v35 = vpop.f32.mrf.mxu1 }
 0xa68   :  { %v1438_v37 = vmul.f32 0.17677669, %v2819_v35 }
 0xa69   :  { %v1428_v40 = vpop.f32.mrf.mxu1 }
 0xa6a   :  { %v1437_v7 = vmul.f32 0.17677669, %v1428_v40  ;;  %v1440_v8 = vsel %vm3164_vm3, %v1438_v37, -1e+30 }
 0xa6b   :  { %v1444_v10 = vsel %vm296_vm4, %v1440_v8, -inf }
 0xa6c   :  { %1445 = vmax.xlane.f32.xlu0 %v1444_v10  ;;  %v1439_v13 = vsel %vm3159_vm2, %v1437_v7, -1e+30 }
 0xa6d   :  { %v1441_v14 = vsel %vm296_vm4, %v1439_v13, -inf }
 0xa6e   :  { %1442 = vmax.xlane.f32.xlu1 %v1441_v14 }
 0xaf5   :  { %v1446_v44 = vpop.xlane.xlu0 %1445 }
 0xaf6   :  { %v1448_v45 = vsub.f32 %v1440_v8, %v1446_v44 }
 0xaf7   :  { %v1443_v46 = vpop.xlane.xlu1 %1442 }
 0xaf8   :  { %v1451_v47 = vmul.f32 1.442695, %v1448_v45  ;;  %v1447_v48 = vsub.f32 %v1439_v13, %v1443_v46 }
 0xafa   :  { %2954 = vpow2.f32 %v1451_v47  ;;  %v1449_v49 = vmul.f32 1.442695, %v1447_v48 }
 0xafc   :  { %2956 = vpow2.f32 %v1449_v49 }
 0xb07   :  { %v2955_v50 = vpop.eup %2954 }
 0xb08   :  { %v1456_v51 = vsel %vm296_vm4, %v2955_v50, 0.0 }
 0xb09   :  { %v2957_v42 = vpop.eup %2956  ;;  %1457 = vadd.xlane.f32.xlu1 %v1456_v51 }
 0xb0a   :  { %v1453_v52 = vsel %vm296_vm4, %v2957_v42, 0.0 }
 0xb0b   :  { %1454 = vadd.xlane.f32.xlu0 %v1453_v52 }
 0xb1a   :  { %1469 = vrot.lane.b32.xlu1 %v3301_v16, %s3079_s2 }
 0xb21   :  { %1471 = vrot.lane.b32.xlu0 %v3299_v15, %s3079_s2 }
 0xb25   :  { %v2812_v56 = vpop.f32.mrf.mxu0 }
 0xb26   :  { %v1343_v57 = vadd.f32 %v2812_v56, %v3362_v0 }
 0xb27   :  { %v1333_v59 = vpop.f32.mrf.mxu0 }
 0xb28   :  { %2485 = vst.msk [vmem:[#allocation8 + $0x8] sm:$0xff] %vm67_vm0, %v1343_v57  ;;  %v1342_v61 = vadd.f32 %v1333_v59, %v1061_v43 }
 0xb2a   :  { %2484 = vst.msk [vmem:[#allocation8] sm:$0xff] %vm67_vm0, %v1342_v61 }
 0xb92   :  { %v1458_v62 = vpop.xlane.xlu1 %1457 }
 0xb93   :  { %2958 = vrcp.f32 %v1458_v62 }
 0xb94   :  { %v1455_v63 = vpop.xlane.xlu0 %1454 }
 0xb95   :  { %2960 = vrcp.f32 %v1455_v63 }
 0xb96   :  { %v3418_v19 = vpop.permute.xlu1 %1469 }
 0xb98   :  { %v3414_v1 = vpop.permute.xlu0 %1471 }
 0xb99   :  { %2820 = vmatprep.subr.mxu0 %v3414_v1  ;;  %2845 = vmatprep.subr.mxu1 %v3414_v1 }
 0xb9a   :  { %2821 = vmatpush3.msra.mxu0 %v3414_v1 }
 0xb9b   :  { %2822 = vmatprep.subr.mxu0 %v3418_v19 }
 0xb9c   :  { %2823 = vmatpush3.msra.mxu0 %v3418_v19 }
 0xb9d   :  { %2838 = vmatprep.subr.msk.mxu0 %vm67_vm0, %v3364_v3 }
 0xba0   :  { %v2959_v9 = vpop.eup %2958 }
 0xba1   :  { %v1462_v0 = vmul.f32 %v2959_v9, %v1458_v62  ;;  %v1922_v62 = vmul.f32 %v3258_v41, %v3301_v16 }
 0xba2   :  { %v2961_v2 = vpop.eup %2960 }
 0xba3   :  { %v1464_v4 = vsub.f32 2.0, %v1462_v0  ;;  %v1461_v5 = vmul.f32 %v2961_v2, %v1455_v63  ;;  %v1923_v63 = vmul.f32 %v3299_v15, %v3258_v41 }
 0xba5   :  { %v1463_v6 = vsub.f32 2.0, %v1461_v5  ;;  %v1466_v12 = vmul.f32 %v2959_v9, %v1464_v4 }
 0xba7   :  { %v1465_v17 = vmul.f32 %v2961_v2, %v1463_v6  ;;  %v1468_v22 = vmul.f32 %v2955_v50, %v1466_v12 }
 0xba9   :  { %v1467_v21 = vmul.f32 %v2957_v42, %v1465_v17 }
 0xbab   :  { %2824 = vmatprep.mubr.msk.f32.mxu0 %vm296_vm4, %v1467_v21 }
 0xbac   :  { %2825 = vmatmul.mubr.msk.f32.vlgmr.msra.gmra.mxu0 %vm296_vm4, %v1468_v22 }
 0xbad   :  { %2839 = vmatpush3.xpose.msk.msra.mxu0 %vm67_vm0, %v3364_v3  ;;  %2842 = vmatprep.mubr.msk.f32.mxu0 %vm67_vm0, %v1641_v25 }
 0xbae   :  { %2840 = vmatprep.subr.msk.mxu0 %vm67_vm0, %v3372_v28 }
 0xbb1   :  { %2841 = vmatpush3.xpose.msk.msra.mxu0 %vm67_vm0, %v3372_v28 }
 0xbb2   :  { %2852 = vmatprep.subr.mxu0 %v3180_v38 }
 0xbb4   :  { %2843 = vmatmul.mubr.msk.f32.vlgmr.msra.gmra.mxu0 %vm67_vm0, %v1642_v26 }
 0xbb5   :  { %2853 = vmatpush3.msra.mxu0 %v3180_v38 }
 0xbb6   :  { %2854 = vmatprep.subr.mxu0 %v3182_v39 }
 0xbb7   :  { %2855 = vmatpush3.msra.mxu0 %v3182_v39 }
 0xbb8   :  { %2856 = vmatprep.subr.mxu0 %v3223_v58 }
 0xbb9   :  { %2857 = vmatpush3.msra.mxu0 %v3223_v58 }
 0xbba   :  { %2858 = vmatprep.subr.mxu0 %v3228_v60 }
 0xbbb   :  { %2859 = vmatpush3.msra.mxu0 %v3228_v60 }
 0xbbc   :  { %2870 = vmatprep.subr.mxu0 %v3414_v1 }
 0xc6c   :  { %v2826_v24 = vpop.f32.mrf.mxu0 }
 0xc6d   :  { %v1557_v30 = vmul.f32 %v2826_v24, %v3136_v11 }
 0xc6e   :  { %v1547_v27 = vpop.f32.mrf.mxu0 }
 0xc6f   :  { %v1556_v29 = vmul.f32 %v3136_v11, %v1547_v27 }
 0xc71   :  { %2835 = vmatprep.mubr.msk.f32.mxu1 %vm67_vm0, %v1556_v29 }
 0xc72   :  { %2836 = vmatmul.mubr.msk.f32.vlgmr.msra.gmra.mxu1 %vm67_vm0, %v1557_v30 }
 0xc73   :  { %2846 = vmatpush3.msra.mxu1 %v3414_v1 }
 0xc74   :  { %v2844_v31 = vpop.f32.mrf.mxu0  ;;  %2847 = vmatprep.subr.mxu1 %v3418_v19 }
 0xc75   :  { %v1725_v32 = vmul.f32 0.17677669, %v2844_v31  ;;  %2848 = vmatpush3.msra.mxu1 %v3418_v19 }
 0xc76   :  { %v1715_v33 = vpop.f32.mrf.mxu0  ;;  %2863 = vmatprep.subr.msk.mxu1 %vm67_vm0, %v3364_v3 }
 0xc77   :  { %v1724_v34 = vmul.f32 0.17677669, %v1715_v33  ;;  %v1727_v11 = vsel %vm3164_vm3, %v1725_v32, -1e+30 }
 0xc78   :  { %v1731_v35 = vsel %vm296_vm4, %v1727_v11, -inf }
 0xc79   :  { %1732 = vmax.xlane.f32.xlu0 %v1731_v35  ;;  %v1726_v37 = vsel %vm3159_vm2, %v1724_v34, -1e+30 }
 0xc7a   :  { %v1728_v40 = vsel %vm296_vm4, %v1726_v37, -inf }
 0xc7b   :  { %1729 = vmax.xlane.f32.xlu1 %v1728_v40 }
 0xd02   :  { %v1733_v7 = vpop.xlane.xlu0 %1732 }
 0xd03   :  { %v1735_v8 = vsub.f32 %v1727_v11, %v1733_v7 }
 0xd04   :  { %v1730_v10 = vpop.xlane.xlu1 %1729 }
 0xd05   :  { %v1738_v13 = vmul.f32 1.442695, %v1735_v8  ;;  %v1734_v14 = vsub.f32 %v1726_v37, %v1730_v10 }
 0xd07   :  { %2962 = vpow2.f32 %v1738_v13  ;;  %v1736_v44 = vmul.f32 1.442695, %v1734_v14 }
 0xd09   :  { %2964 = vpow2.f32 %v1736_v44 }
 0xd14   :  { %v2963_v45 = vpop.eup %2962 }
 0xd15   :  { %v1743_v46 = vsel %vm296_vm4, %v2963_v45, 0.0 }
 0xd16   :  { %v2965_v47 = vpop.eup %2964  ;;  %1744 = vadd.xlane.f32.xlu1 %v1743_v46 }
 0xd17   :  { %v1740_v48 = vsel %vm296_vm4, %v2965_v47, 0.0 }
 0xd18   :  { %1741 = vadd.xlane.f32.xlu0 %v1740_v48 }
 0xd32   :  { %v2837_v9 = vpop.f32.mrf.mxu1 }
 0xd33   :  { %v1640_v40 = vadd.f32 %v2837_v9, %v3306_v18 }
 0xd34   :  { %v3488_v0 = vpop.f32.mrf.mxu1 }
 0xd9f   :  { %v1745_v49 = vpop.xlane.xlu1 %1744 }
 0xda0   :  { %2966 = vrcp.f32 %v1745_v49 }
 0xda1   :  { %v1742_v50 = vpop.xlane.xlu0 %1741 }
 0xda2   :  { %2968 = vrcp.f32 %v1742_v50 }
 0xdad   :  { %v2967_v51 = vpop.eup %2966 }
 0xdae   :  { %v1749_v42 = vmul.f32 %v2967_v51, %v1745_v49 }
 0xdaf   :  { %v2969_v52 = vpop.eup %2968 }
 0xdb0   :  { %v1751_v54 = vsub.f32 2.0, %v1749_v42  ;;  %v1748_v55 = vmul.f32 %v2969_v52, %v1742_v50 }
 0xdb2   :  { %v1750_v56 = vsub.f32 2.0, %v1748_v55  ;;  %v1753_v43 = vmul.f32 %v2967_v51, %v1751_v54  ;;  %v2204_v54 = vmul.f32 %v3299_v15, %v3317_v36 }
 0xdb4   :  { %v1752_v57 = vmul.f32 %v2969_v52, %v1750_v56  ;;  %v1755_v61 = vmul.f32 %v2963_v45, %v1753_v43  ;;  %v2203_v52 = vmul.f32 %v3317_v36, %v3301_v16 }
 0xdb6   :  { %v1754_v59 = vmul.f32 %v2965_v47, %v1752_v57 }
 0xdb8   :  { %2849 = vmatprep.mubr.msk.f32.mxu1 %vm296_vm4, %v1754_v59 }
 0xdb9   :  { %2850 = vmatmul.mubr.msk.f32.vlgmr.msra.gmra.mxu1 %vm296_vm4, %v1755_v61 }
 0xdba   :  { %2864 = vmatpush3.xpose.msk.msra.mxu1 %vm67_vm0, %v3364_v3  ;;  %2867 = vmatprep.mubr.msk.f32.mxu1 %vm67_vm0, %v1922_v62 }
 0xdbb   :  { %2865 = vmatprep.subr.msk.mxu1 %vm67_vm0, %v3372_v28 }
 0xdbe   :  { %2866 = vmatpush3.xpose.msk.msra.mxu1 %vm67_vm0, %v3372_v28 }
 0xdbf   :  { %2877 = vmatprep.subr.mxu1 %v3180_v38 }
 0xdc1   :  { %2868 = vmatmul.mubr.msk.f32.vlgmr.msra.gmra.mxu1 %vm67_vm0, %v1923_v63 }
 0xdc2   :  { %2878 = vmatpush3.msra.mxu1 %v3180_v38 }
 0xdc3   :  { %2879 = vmatprep.subr.mxu1 %v3182_v39 }
 0xdc4   :  { %2880 = vmatpush3.msra.mxu1 %v3182_v39 }
 0xdc5   :  { %2881 = vmatprep.subr.mxu1 %v3223_v58 }
 0xdc6   :  { %2882 = vmatpush3.msra.mxu1 %v3223_v58 }
 0xdc7   :  { %2883 = vmatprep.subr.mxu1 %v3228_v60 }
 0xdc8   :  { %2884 = vmatpush3.msra.mxu1 %v3228_v60 }
 0xdc9   :  { %2895 = vmatprep.subr.mxu1 %v3414_v1 }
 0xe79   :  { %v2851_v2 = vpop.f32.mrf.mxu1 }
 0xe7a   :  { %v1838_v6 = vmul.f32 %v2851_v2, %v3202_v53 }
 0xe7b   :  { %v1828_v4 = vpop.f32.mrf.mxu1 }
 0xe7c   :  { %v1837_v5 = vmul.f32 %v3202_v53, %v1828_v4 }
 0xe7e   :  { %2860 = vmatprep.mubr.msk.f32.mxu0 %vm67_vm0, %v1837_v5 }
 0xe7f   :  { %2861 = vmatmul.mubr.msk.f32.vlgmr.msra.gmra.mxu0 %vm67_vm0, %v1838_v6 }
 0xe80   :  { %2871 = vmatpush3.msra.mxu0 %v3414_v1 }
 0xe81   :  { %v2869_v12 = vpop.f32.mrf.mxu1  ;;  %2872 = vmatprep.subr.mxu0 %v3418_v19 }
 0xe82   :  { %v2006_v17 = vmul.f32 0.17677669, %v2869_v12  ;;  %2873 = vmatpush3.msra.mxu0 %v3418_v19 }
 0xe83   :  { %v1996_v21 = vpop.f32.mrf.mxu1  ;;  %2888 = vmatprep.subr.msk.mxu0 %vm67_vm0, %v3364_v3 }
 0xe84   :  { %v2005_v22 = vmul.f32 0.17677669, %v1996_v21  ;;  %v2008_v53 = vsel %vm3164_vm3, %v2006_v17, -1e+30 }
 0xe85   :  { %v2012_v25 = vsel %vm296_vm4, %v2008_v53, -inf }
 0xe86   :  { %2013 = vmax.xlane.f32.xlu1 %v2012_v25  ;;  %v2007_v26 = vsel %vm3159_vm2, %v2005_v22, -1e+30 }
 0xe87   :  { %v2009_v24 = vsel %vm296_vm4, %v2007_v26, -inf }
 0xe88   :  { %2010 = vmax.xlane.f32.xlu0 %v2009_v24 }
 0xf0f   :  { %v2014_v27 = vpop.xlane.xlu1 %2013 }
 0xf10   :  { %v2016_v29 = vsub.f32 %v2008_v53, %v2014_v27 }
 0xf11   :  { %v2011_v30 = vpop.xlane.xlu0 %2010 }
 0xf12   :  { %v2019_v31 = vmul.f32 1.442695, %v2016_v29  ;;  %v2015_v32 = vsub.f32 %v2007_v26, %v2011_v30 }
 0xf14   :  { %2970 = vpow2.f32 %v2019_v31  ;;  %v2017_v33 = vmul.f32 1.442695, %v2015_v32 }
 0xf16   :  { %2972 = vpow2.f32 %v2017_v33 }
 0xf21   :  { %v2971_v34 = vpop.eup %2970 }
 0xf22   :  { %v2024_v11 = vsel %vm296_vm4, %v2971_v34, 0.0 }
 0xf23   :  { %v2973_v35 = vpop.eup %2972  ;;  %2025 = vadd.xlane.f32.xlu1 %v2024_v11 }
 0xf24   :  { %v2021_v37 = vsel %vm296_vm4, %v2973_v35, 0.0 }
 0xf25   :  { %2022 = vadd.xlane.f32.xlu0 %v2021_v37 }
 0xf3f   :  { %v2862_v7 = vpop.f32.mrf.mxu0 }
 0xf40   :  { %v3508_v8 = vadd.f32 %v2862_v7, %v1640_v40 }
 0xf41   :  { %v1911_v16 = vpop.f32.mrf.mxu0 }
 0xfac   :  { %v2026_v10 = vpop.xlane.xlu1 %2025 }
 0xfad   :  { %2974 = vrcp.f32 %v2026_v10 }
 0xfae   :  { %v2023_v13 = vpop.xlane.xlu0 %2022 }
 0xfaf   :  { %2976 = vrcp.f32 %v2023_v13 }
 0xfba   :  { %v2975_v14 = vpop.eup %2974 }
 0xfbb   :  { %v2030_v44 = vmul.f32 %v2975_v14, %v2026_v10 }
 0xfbc   :  { %v2977_v45 = vpop.eup %2976 }
 0xfbd   :  { %v2032_v46 = vsub.f32 2.0, %v2030_v44  ;;  %v2029_v47 = vmul.f32 %v2977_v45, %v2023_v13 }
 0xfbf   :  { %v2031_v48 = vsub.f32 2.0, %v2029_v47  ;;  %v2034_v49 = vmul.f32 %v2975_v14, %v2032_v46 }
 0xfc1   :  { %v2033_v50 = vmul.f32 %v2977_v45, %v2031_v48  ;;  %v2036_v42 = vmul.f32 %v2971_v34, %v2034_v49 }
 0xfc3   :  { %v2035_v51 = vmul.f32 %v2973_v35, %v2033_v50  ;;  %v1639_v35 = vadd.f32 %v3306_v18, %v3488_v0 }
 0xfc5   :  { %2874 = vmatprep.mubr.msk.f32.mxu0 %vm296_vm4, %v2035_v51  ;;  %v1920_v37 = vadd.f32 %v1911_v16, %v1639_v35 }
 0xfc6   :  { %2875 = vmatmul.mubr.msk.f32.vlgmr.msra.gmra.mxu0 %vm296_vm4, %v2036_v42 }
 0xfc7   :  { %2889 = vmatpush3.xpose.msk.msra.mxu0 %vm67_vm0, %v3364_v3  ;;  %2892 = vmatprep.mubr.msk.f32.mxu0 %vm67_vm0, %v2203_v52 }
 0xfc8   :  { %2890 = vmatprep.subr.msk.mxu0 %vm67_vm0, %v3372_v28 }
 0xfcb   :  { %2891 = vmatpush3.xpose.msk.msra.mxu0 %vm67_vm0, %v3372_v28 }
 0xfcc   :  { %2902 = vmatprep.subr.mxu0 %v3180_v38 }
 0xfce   :  { %2893 = vmatmul.mubr.msk.f32.vlgmr.msra.gmra.mxu0 %vm67_vm0, %v2204_v54 }
 0xfcf   :  { %2903 = vmatpush3.msra.mxu0 %v3180_v38 }
 0xfd0   :  { %2904 = vmatprep.subr.mxu0 %v3182_v39 }
 0xfd1   :  { %2905 = vmatpush3.msra.mxu0 %v3182_v39 }
 0xfd2   :  { %2906 = vmatprep.subr.mxu0 %v3223_v58 }
 0xfd3   :  { %2907 = vmatpush3.msra.mxu0 %v3223_v58 }
 0xfd4   :  { %2908 = vmatprep.subr.mxu0 %v3228_v60 }
 0xfd5   :  { %2909 = vmatpush3.msra.mxu0 %v3228_v60 }
0x1086   :  { %v2876_v15 = vpop.f32.mrf.mxu0 }
0x1087   :  { %v2119_v55 = vmul.f32 %v2876_v15, %v3258_v41 }
0x1088   :  { %v2109_v3 = vpop.f32.mrf.mxu0 }
0x1089   :  { %v2118_v28 = vmul.f32 %v3258_v41, %v2109_v3 }
0x108b   :  { %2885 = vmatprep.mubr.msk.f32.mxu1 %vm67_vm0, %v2118_v28 }
0x108c   :  { %2886 = vmatmul.mubr.msk.f32.vlgmr.msra.gmra.mxu1 %vm67_vm0, %v2119_v55 }
0x108d   :  { %2896 = vmatpush3.msra.mxu1 %v3414_v1 }
0x108e   :  { %v2894_v38 = vpop.f32.mrf.mxu0  ;;  %2897 = vmatprep.subr.mxu1 %v3418_v19 }
0x108f   :  { %v2287_v39 = vmul.f32 0.17677669, %v2894_v38  ;;  %2898 = vmatpush3.msra.mxu1 %v3418_v19 }
0x1090   :  { %v2277_v58 = vpop.f32.mrf.mxu0 }
0x1091   :  { %v2286_v60 = vmul.f32 0.17677669, %v2277_v58  ;;  %v2289_v56 = vsel %vm3164_vm3, %v2287_v39, -1e+30 }
0x1092   :  { %v2293_v43 = vsel %vm296_vm4, %v2289_v56, -inf }
0x1093   :  { %2294 = vmax.xlane.f32.xlu1 %v2293_v43  ;;  %v2288_v41 = vsel %vm3159_vm2, %v2286_v60, -1e+30 }
0x1094   :  { %v2290_v57 = vsel %vm296_vm4, %v2288_v41, -inf }
0x1095   :  { %2291 = vmax.xlane.f32.xlu0 %v2290_v57 }
0x111c   :  { %v2295_v1 = vpop.xlane.xlu1 %2294 }
0x111d   :  { %v2297_v59 = vsub.f32 %v2289_v56, %v2295_v1 }
0x111e   :  { %v2292_v61 = vpop.xlane.xlu0 %2291 }
0x111f   :  { %v2300_v62 = vmul.f32 1.442695, %v2297_v59  ;;  %v2296_v63 = vsub.f32 %v2288_v41, %v2292_v61 }
0x1121   :  { %2978 = vpow2.f32 %v2300_v62  ;;  %v2298_v19 = vmul.f32 1.442695, %v2296_v63 }
0x1123   :  { %2980 = vpow2.f32 %v2298_v19 }
0x112e   :  { %v2979_v9 = vpop.eup %2978 }
0x112f   :  { %v2305_v23 = vsel %vm296_vm4, %v2979_v9, 0.0 }
0x1130   :  { %v2981_v2 = vpop.eup %2980  ;;  %2306 = vadd.xlane.f32.xlu1 %v2305_v23 }
0x1131   :  { %v2302_v4 = vsel %vm296_vm4, %v2981_v2, 0.0 }
0x1132   :  { %2303 = vadd.xlane.f32.xlu0 %v2302_v4 }
0x114c   :  { %v2887_v20 = vpop.f32.mrf.mxu1 }
0x114d   :  { %v2202_v5 = vadd.f32 %v2887_v20, %v3508_v8 }
0x114e   :  { %v2192_v31 = vpop.f32.mrf.mxu1 }
0x114f   :  { %v2201_v7 = vadd.f32 %v2192_v31, %v1920_v37 }
0x11b9   :  { %v2307_v6 = vpop.xlane.xlu1 %2306 }
0x11ba   :  { %2982 = vrcp.f32 %v2307_v6 }
0x11bb   :  { %v2304_v12 = vpop.xlane.xlu0 %2303 }
0x11bc   :  { %2984 = vrcp.f32 %v2304_v12 }
0x11c7   :  { %v2983_v17 = vpop.eup %2982 }
0x11c8   :  { %v2311_v21 = vmul.f32 %v2983_v17, %v2307_v6 }
0x11c9   :  { %v2985_v22 = vpop.eup %2984 }
0x11ca   :  { %v2313_v53 = vsub.f32 2.0, %v2311_v21  ;;  %v2310_v25 = vmul.f32 %v2985_v22, %v2304_v12 }
0x11cc   :  { %v2312_v26 = vsub.f32 2.0, %v2310_v25  ;;  %v2315_v24 = vmul.f32 %v2983_v17, %v2313_v53 }
0x11ce   :  { %v2314_v27 = vmul.f32 %v2985_v22, %v2312_v26  ;;  %v2317_v30 = vmul.f32 %v2979_v9, %v2315_v24 }
0x11d0   :  { %v2316_v29 = vmul.f32 %v2981_v2, %v2314_v27 }
0x11d2   :  { %2899 = vmatprep.mubr.msk.f32.mxu1 %vm296_vm4, %v2316_v29 }
0x11d3   :  { %2900 = vmatmul.mubr.msk.f32.vlgmr.msra.gmra.mxu1 %vm296_vm4, %v2317_v30 }
0x1293   :  { %v2901_v32 = vpop.f32.mrf.mxu1 }
0x1294   :  { %v2400_v11 = vmul.f32 %v2901_v32, %v3317_v36 }
0x1295   :  { %v2390_v33 = vpop.f32.mrf.mxu1 }
0x1296   :  { %v2399_v34 = vmul.f32 %v3317_v36, %v2390_v33 }
0x1298   :  { %2910 = vmatprep.mubr.msk.f32.mxu0 %vm67_vm0, %v2399_v34 }
0x1299   :  { %2911 = vmatmul.mubr.msk.f32.vlgmr.msra.gmra.mxu0 %vm67_vm0, %v2400_v11 }
0x1359   :  { %v2912_v40 = vpop.f32.mrf.mxu0 }
0x135a   :  { %v2483_v8 = vadd.f32 %v2912_v40, %v2202_v5 }
0x135b   :  { %v2473_v10 = vpop.f32.mrf.mxu0 }
0x135c   :  { %2487 = vst.msk [vmem:[#allocation8 + $0x18] sm:$0xff] %vm67_vm0, %v2483_v8  ;;  %v2482_v13 = vadd.f32 %v2473_v10, %v2201_v7 }
0x135e   :  { %2486 = vst.msk [vmem:[#allocation8 + $0x10] sm:$0xff] %vm67_vm0, %v2482_v13 }
0x135f   :  { %3057 = shalt.err (!%p3054_p5)
}
0x1360   :  { %2499 = dma.vmem_to_hbm [thread:$0]  %s2494_s7, 512, %s3568_s4, [#allocation4], %s3074_s20, %s3074_s20, %s3075_s21  }
0x1361   :  { %3070 = dma.done.wait [#allocation4], 512  }
0x1362   :  { %3071 = vsyncadd [#allocation4], 4294966784 }
0x1363   :  { %2503 = vsyncpa [#allocation3], 1 }
0x1364   :  { %2504 = vsyncpa [#allocation6], 1 }
0x1365   :  { %2505 = vsyncpa [#allocation4], 1 }

</bundles_post_ra>
